<compile_context>
chip_gen: v7x
topology: tpu7x:2x2x1
jax: 0.10.0
libtpu: 0.0.40
codegen_flags: <defaults>
</compile_context>

<pallas_src>
import functools

import jax
import jax.numpy as jnp
from jax.experimental import pallas as pl
from jax.experimental.pallas import tpu as pltpu

EPS = 1e-6
NUM_GROUPS = 32


# --------------------------- in-kernel helpers ------------------------------ #

def _group_norm_swish(xf, gamma, beta, cg, gc):
    """GroupNorm(32, eps=1e-6, affine) + x*sigmoid(x).

    xf: (HW, C) fp32.  gamma/beta: (1, C) fp32.
    cg: (C, G) one-hot scaled by 1/count, gc: (G, C) one-hot; both fp32 and
    passed in with a constant index_map so they are DMA'd once, not rebuilt
    from iotas every grid step.  Two-pass mean/variance.
    """
    s_c = jnp.sum(xf, axis=0, keepdims=True)                       # (1, C)
    mean = jnp.dot(jnp.dot(s_c, cg, preferred_element_type=jnp.float32),
                   gc, preferred_element_type=jnp.float32)         # group mean, bcast to C
    d = xf - mean
    ss_c = jnp.sum(d * d, axis=0, keepdims=True)                   # (1, C)
    var = jnp.dot(jnp.dot(ss_c, cg, preferred_element_type=jnp.float32),
                  gc, preferred_element_type=jnp.float32)          # group var, bcast to C
    scale = jax.lax.rsqrt(var + EPS) * gamma                       # (1, C)
    y = d * scale + beta
    return y * jax.nn.sigmoid(y)                                   # swish (EUP)


def _conv3x3_taps(yf, w_ref, H, W):
    """3x3 'same' conv as 9 per-tap matmuls accumulated in fp32.

    yf: (H*W, C) fp32 activation.  w_ref: (9, C, Co) bf16 weights (tap-major).
    The +-1 row/col shifts are pltpu.roll on the flattened sublane axis plus a
    boundary mask (zero padding semantics); no pad scratch, no im2col buffer,
    no misaligned slices.  Returns (H*W, Co) fp32.
    """
    HW, C = yf.shape
    r = jax.lax.broadcasted_iota(jnp.int32, (HW, C), 0)            # flattened row id
    if (W & (W - 1)) == 0:                                         # W power of two
        w_idx = jnp.bitwise_and(r, W - 1)
    else:
        w_idx = r % W
    h_ge1 = r >= W                      # output row h >= 1
    h_leN = r < (H - 1) * W             # output row h <= H-2
    w_ge1 = w_idx >= 1
    w_leN = w_idx <= W - 2

    acc = None
    for dy in range(3):
        for dx in range(3):
            off = (dy - 1) * W + (dx - 1)      # tap reads yf[r + off]
            if off == 0:
                tap = yf
            else:
                tap = pltpu.roll(yf, shift=(-off) % HW, axis=0)
            mask = None
            if dy == 0:
                mask = h_ge1
            elif dy == 2:
                mask = h_leN
            if dx == 0:
                mask = w_ge1 if mask is None else mask & w_ge1
            elif dx == 2:
                mask = w_leN if mask is None else mask & w_leN
            if mask is not None:
                tap = jnp.where(mask, tap, 0.0)
            p = jnp.dot(tap.astype(jnp.bfloat16), w_ref[dy * 3 + dx],
                        preferred_element_type=jnp.float32)
            acc = p if acc is None else acc + p
    return acc


# ------------------------------- kernels ------------------------------------ #

def _gn_swish_conv1_kernel(x_ref, g_ref, b_ref, cg_ref, gc_ref, w_ref, bias_ref,
                           o_ref):
    """Fused GroupNorm -> swish -> conv3x3 for one batch element."""
    _, H, W, Ci = x_ref.shape
    Co = o_ref.shape[3]
    xf = x_ref[...].astype(jnp.float32).reshape(H * W, Ci)
    y = _group_norm_swish(xf, g_ref[...], b_ref[...], cg_ref[...], gc_ref[...])
    acc = _conv3x3_taps(y, w_ref, H, W) + bias_ref[...]
    o_ref[...] = acc.reshape(1, H, W, Co).astype(o_ref.dtype)


def _gn_swish_conv2_res_kernel(mode, *args):
    """Fused GroupNorm -> swish -> [dropout] -> conv3x3 -> + shortcut(x)."""
    if mode == "identity":
        (h_ref, g_ref, b_ref, cg_ref, gc_ref, w_ref, bias_ref, x_ref,
         o_ref) = args
        sw_ref = sb_ref = None
    else:  # "nin" (1x1) or "conv" (3x3) shortcut
        (h_ref, g_ref, b_ref, cg_ref, gc_ref, w_ref, bias_ref, x_ref,
         sw_ref, sb_ref, o_ref) = args

    _, H, W, Cm = h_ref.shape
    Co = o_ref.shape[3]
    Ci = x_ref.shape[3]

    hf = h_ref[...].astype(jnp.float32).reshape(H * W, Cm)
    y = _group_norm_swish(hf, g_ref[...], b_ref[...], cg_ref[...], gc_ref[...])
    # TODO(synk): dropout is identity (inference / eval mode).
    acc = _conv3x3_taps(y, w_ref, H, W) + bias_ref[...]

    if mode == "identity":
        res = x_ref[...].astype(jnp.float32).reshape(H * W, Co)
    elif mode == "nin":
        xb = x_ref[...].astype(jnp.bfloat16).reshape(H * W, Ci)
        res = jnp.dot(xb, sw_ref[...], preferred_element_type=jnp.float32)
        res = res + sb_ref[...]
    else:  # "conv": 3x3 shortcut conv on the raw input
        xf32 = x_ref[...].astype(jnp.float32).reshape(H * W, Ci)
        res = _conv3x3_taps(xf32, sw_ref, H, W) + sb_ref[...]

    o_ref[...] = (acc + res).reshape(1, H, W, Co).astype(o_ref.dtype)


# ------------------------------- wrappers ------------------------------------ #

def _group_matrices(C, count):
    """(C, G) one-hot / count and (G, C) one-hot combine operands (fp32)."""
    cpg = C // NUM_GROUPS
    grp = jnp.arange(C, dtype=jnp.int32) // cpg
    gid = jnp.arange(NUM_GROUPS, dtype=jnp.int32)
    cg = (grp[:, None] == gid[None, :]).astype(jnp.float32) / float(count)
    gc = (gid[:, None] == grp[None, :]).astype(jnp.float32)
    return cg, gc


def _mosaic_params(block_bytes, temp_bytes):
    """Explicit scoped-VMEM limit sized to the per-step footprint.

    Blocks are double-buffered by the pipeline; temp_bytes is a rough bound on
    in-kernel fp32 temporaries.  Clamped to 3/4 of physical VMEM so the same
    code picks sane limits on v7x (64 MiB) vs v5e/v6e (128 MiB).
    """
    want = max(32 << 20, 2 * block_bytes + temp_bytes + (8 << 20))
    try:
        cap = int(pltpu.get_tpu_info().vmem_capacity_bytes)
    except Exception:  # conservative fallback (v7x physical size)
        cap = 64 << 20
    return pltpu.CompilerParams(
        dimension_semantics=("parallel",),
        vmem_limit_bytes=int(min(want, (cap * 3) // 4)))


def gn_swish_conv3x3(x, gamma, beta, w, b, *, out_dtype=None):
    """conv3x3(swish(GN(x))).  x: (N,H,W,Ci), w: (3,3,Ci,Co) HWIO, b: (Co,)."""
    N, H, W, Ci = x.shape
    Co = w.shape[-1]
    assert Ci % NUM_GROUPS == 0, "GroupNorm(32) requires C % 32 == 0"
    out_dtype = x.dtype if out_dtype is None else out_dtype

    gamma2 = gamma.reshape(1, Ci).astype(jnp.float32)
    beta2 = beta.reshape(1, Ci).astype(jnp.float32)
    cg, gc = _group_matrices(Ci, H * W * (Ci // NUM_GROUPS))
    w9 = w.reshape(9, Ci, Co).astype(jnp.bfloat16)        # tap-major weights
    b2 = b.reshape(1, Co).astype(jnp.float32)

    x_blk = H * W * Ci * x.dtype.itemsize
    o_blk = H * W * Co * jnp.dtype(out_dtype).itemsize
    w_bytes = 9 * Ci * Co * 2
    const_bytes = (2 * Ci + Co) * 4 + 2 * Ci * NUM_GROUPS * 4
    temps = H * W * (4 * Ci + 2 * Co) * 4                 # fp32 working-set estimate

    cost = pl.CostEstimate(
        flops=2 * N * H * W * 9 * Ci * Co,
        transcendentals=N * H * W * Ci,                   # sigmoid
        bytes_accessed=int(N * (x_blk + o_blk) + w_bytes + const_bytes))

    return pl.pallas_call(
        _gn_swish_conv1_kernel,
        out_shape=jax.ShapeDtypeStruct((N, H, W, Co), out_dtype),
        grid=(N,),
        in_specs=[
            pl.BlockSpec((1, H, W, Ci), lambda n: (n, 0, 0, 0)),
            pl.BlockSpec((1, Ci), lambda n: (0, 0)),
            pl.BlockSpec((1, Ci), lambda n: (0, 0)),
            pl.BlockSpec((Ci, NUM_GROUPS), lambda n: (0, 0)),
            pl.BlockSpec((NUM_GROUPS, Ci), lambda n: (0, 0)),
            pl.BlockSpec((9, Ci, Co), lambda n: (0, 0, 0)),
            pl.BlockSpec((1, Co), lambda n: (0, 0)),
        ],
        out_specs=pl.BlockSpec((1, H, W, Co), lambda n: (n, 0, 0, 0)),
        compiler_params=_mosaic_params(x_blk + o_blk + w_bytes + const_bytes, temps),
        cost_estimate=cost,
    )(x, gamma2, beta2, cg, gc, w9, b2)


def gn_swish_conv3x3_residual(h, gamma, beta, w, b, x, *, mode,
                              shortcut_w=None, shortcut_b=None, out_dtype=None):
    """out = conv3x3(swish(GN(h))) + shortcut(x)  (identity / 1x1 / 3x3)."""
    N, H, W, Cm = h.shape
    Co = w.shape[-1]
    Ci = x.shape[-1]
    assert Cm % NUM_GROUPS == 0, "GroupNorm(32) requires C % 32 == 0"
    out_dtype = x.dtype if out_dtype is None else out_dtype

    gamma2 = gamma.reshape(1, Cm).astype(jnp.float32)
    beta2 = beta.reshape(1, Cm).astype(jnp.float32)
    cg, gc = _group_matrices(Cm, H * W * (Cm // NUM_GROUPS))
    w9 = w.reshape(9, Cm, Co).astype(jnp.bfloat16)
    b2 = b.reshape(1, Co).astype(jnp.float32)

    inputs = [h, gamma2, beta2, cg, gc, w9, b2, x]
    in_specs = [
        pl.BlockSpec((1, H, W, Cm), lambda n: (n, 0, 0, 0)),
        pl.BlockSpec((1, Cm), lambda n: (0, 0)),
        pl.BlockSpec((1, Cm), lambda n: (0, 0)),
        pl.BlockSpec((Cm, NUM_GROUPS), lambda n: (0, 0)),
        pl.BlockSpec((NUM_GROUPS, Cm), lambda n: (0, 0)),
        pl.BlockSpec((9, Cm, Co), lambda n: (0, 0, 0)),
        pl.BlockSpec((1, Co), lambda n: (0, 0)),
        pl.BlockSpec((1, H, W, Ci), lambda n: (n, 0, 0, 0)),
    ]

    flops = 2 * N * H * W * 9 * Cm * Co
    if mode == "nin":
        inputs += [shortcut_w.reshape(Ci, Co).astype(jnp.bfloat16),
                   shortcut_b.reshape(1, Co).astype(jnp.float32)]
        in_specs += [pl.BlockSpec((Ci, Co), lambda n: (0, 0)),
                     pl.BlockSpec((1, Co), lambda n: (0, 0))]
        flops += 2 * N * H * W * Ci * Co
    elif mode == "conv":
        inputs += [shortcut_w.reshape(9, Ci, Co).astype(jnp.bfloat16),
                   shortcut_b.reshape(1, Co).astype(jnp.float32)]
        in_specs += [pl.BlockSpec((9, Ci, Co), lambda n: (0, 0, 0)),
                     pl.BlockSpec((1, Co), lambda n: (0, 0))]
        flops += 2 * N * H * W * 9 * Ci * Co
    else:
        assert mode == "identity" and Ci == Co

    h_blk = H * W * Cm * h.dtype.itemsize
    x_blk = H * W * Ci * x.dtype.itemsize
    o_blk = H * W * Co * jnp.dtype(out_dtype).itemsize
    const_bytes = sum(int(a.size) * a.dtype.itemsize
                      for a in (inputs[1:7] + inputs[8:]))
    temps = H * W * (4 * Cm + 2 * Ci + 2 * Co) * 4

    cost = pl.CostEstimate(
        flops=int(flops),
        transcendentals=N * H * W * Cm,
        bytes_accessed=int(N * (h_blk + x_blk + o_blk) + const_bytes))

    return pl.pallas_call(
        functools.partial(_gn_swish_conv2_res_kernel, mode),
        out_shape=jax.ShapeDtypeStruct((N, H, W, Co), out_dtype),
        grid=(N,),
        in_specs=in_specs,
        out_specs=pl.BlockSpec((1, H, W, Co), lambda n: (n, 0, 0, 0)),
        compiler_params=_mosaic_params(h_blk + x_blk + o_blk + const_bytes, temps),
        cost_estimate=cost,
    )(*inputs)


def resnet_block_nhwc(x, params, *, conv_shortcut=False):
    """ResnetBlock forward on NHWC input (dropout = identity / eval mode)."""
    out_dtype = x.dtype
    h = gn_swish_conv3x3(x, params["norm1_gamma"], params["norm1_beta"],
                         params["conv1_w"], params["conv1_b"],
                         out_dtype=jnp.bfloat16)  # bf16 intermediate halves HBM traffic
    cin = x.shape[-1]
    cout = params["conv1_w"].shape[-1]
    if cin != cout:
        if conv_shortcut:
            mode, sw, sb = "conv", params["convs_w"], params["convs_b"]
        else:
            mode, sw, sb = "nin", params["nin_w"], params["nin_b"]
        # x only feeds a bf16 shortcut matmul -> ship it in bf16 (halves DMA).
        x_in = x.astype(jnp.bfloat16)
    else:
        mode, sw, sb = "identity", None, None
        x_in = x                                  # keep the residual add in fp32
    return gn_swish_conv3x3_residual(
        h, params["norm2_gamma"], params["norm2_beta"],
        params["conv2_w"], params["conv2_b"], x_in,
        mode=mode, shortcut_w=sw, shortcut_b=sb, out_dtype=out_dtype)


def resnet_block_nchw(x_nchw, params, *, conv_shortcut=False):
    # TODO(synk): interface-only transposes; keep the model NHWC end-to-end in
    # production (or fold into the first/last kernel) to save two HBM passes.
    x = jnp.transpose(x_nchw, (0, 2, 3, 1))                # NCHW -> NHWC
    y = resnet_block_nhwc(x, params, conv_shortcut=conv_shortcut)
    return jnp.transpose(y, (0, 3, 1, 2))                  # NHWC -> NCHW


# --------------------------- reference (plain JAX) --------------------------- #

def _gn_ref(x, gamma, beta):
    N, H, W, C = x.shape
    g = NUM_GROUPS
    xg = x.reshape(N, H, W, g, C // g)
    mean = xg.mean(axis=(1, 2, 4), keepdims=True)
    var = xg.var(axis=(1, 2, 4), keepdims=True)
    xn = ((xg - mean) / jnp.sqrt(var + EPS)).reshape(N, H, W, C)
    return xn * gamma.reshape(1, 1, 1, C) + beta.reshape(1, 1, 1, C)


def _swish_ref(x):
    return x * jax.nn.sigmoid(x)


def _conv_ref(x, w, b):
    y = jax.lax.conv_general_dilated(
        x, w, window_strides=(1, 1), padding="SAME",
        dimension_numbers=("NHWC", "HWIO", "NHWC"))
    return y + b.reshape(1, 1, 1, -1)


def _resnet_ref_nhwc(x, p, conv_shortcut=False):
    h = _swish_ref(_gn_ref(x, p["norm1_gamma"], p["norm1_beta"]))
    h = _conv_ref(h, p["conv1_w"], p["conv1_b"])
    h = _swish_ref(_gn_ref(h, p["norm2_gamma"], p["norm2_beta"]))
    h = _conv_ref(h, p["conv2_w"], p["conv2_b"])
    cin, cout = x.shape[-1], h.shape[-1]
    if cin != cout:
        if conv_shortcut:
            x = _conv_ref(x, p["convs_w"], p["convs_b"])
        else:
            x = (jnp.einsum("nhwi,io->nhwo", x, p["nin_w"])
                 + p["nin_b"].reshape(1, 1, 1, -1))
    return x + h


# ----------------------------------- main ------------------------------------ #

def make_params(key, cin, cout):
    ks = jax.random.split(key, 12)

    def nrm(k, shape):
        return jax.random.normal(k, shape, jnp.float32)

    return {
        "norm1_gamma": 1.0 + 0.05 * nrm(ks[0], (cin,)),
        "norm1_beta": 0.05 * nrm(ks[1], (cin,)),
        "conv1_w": 0.1 * nrm(ks[2], (3, 3, cin, cout)),
        "conv1_b": 0.05 * nrm(ks[3], (cout,)),
        "norm2_gamma": 1.0 + 0.05 * nrm(ks[4], (cout,)),
        "norm2_beta": 0.05 * nrm(ks[5], (cout,)),
        "conv2_w": 0.1 * nrm(ks[6], (3, 3, cout, cout)),
        "conv2_b": 0.05 * nrm(ks[7], (cout,)),
        "nin_w": 0.1 * nrm(ks[8], (cin, cout)),
        "nin_b": 0.05 * nrm(ks[9], (cout,)),
        "convs_w": 0.1 * nrm(ks[10], (3, 3, cin, cout)),
        "convs_b": 0.05 * nrm(ks[11], (cout,)),
    }


if __name__ == "__main__":
    N, H, W = 2, 8, 8
    root = jax.random.PRNGKey(0)

    cases = [
        (32, 64, False),   # nin (1x1) shortcut: in_channels != out_channels
        (32, 32, False),   # identity shortcut: in_channels == out_channels
        (32, 64, True),    # conv3x3 shortcut
    ]
    for i, (cin, cout, conv_sc) in enumerate(cases):
        kp, kx = jax.random.split(jax.random.fold_in(root, i))
        params = make_params(kp, cin, cout)
        x_nchw = jax.random.normal(kx, (N, cin, H, W), jnp.float32)

        fwd = jax.jit(functools.partial(resnet_block_nchw, conv_shortcut=conv_sc))
        out = jax.block_until_ready(fwd(x_nchw, params))

        x_nhwc = jnp.transpose(x_nchw, (0, 2, 3, 1))
        ref = jnp.transpose(
            _resnet_ref_nhwc(x_nhwc, params, conv_shortcut=conv_sc), (0, 3, 1, 2))
        assert out.shape == (N, cout, H, W)
        err = float(jnp.max(jnp.abs(out - ref)))
        # bf16 matmul operands + bf16 intermediate -> loose tolerance vs fp32 ref.
        assert jnp.allclose(out, ref, atol=3e-2, rtol=3e-2), (cin, cout, conv_sc, err)

    print("KERNEL_OK")
</pallas_src>

<mosaic_0001>
module attributes {stable_mosaic.version = 11 : i64} {
  func.func @_gn_swish_conv1_kernel(%arg0: i32, %arg1: memref<1x8x8x32xf32, #tpu.memory_space<vmem>>, %arg2: memref<1x32xf32, #tpu.memory_space<vmem>>, %arg3: memref<1x32xf32, #tpu.memory_space<vmem>>, %arg4: memref<32x32xf32, #tpu.memory_space<vmem>>, %arg5: memref<32x32xf32, #tpu.memory_space<vmem>>, %arg6: memref<9x32x64xbf16, #tpu.memory_space<vmem>>, %arg7: memref<1x64xf32, #tpu.memory_space<vmem>>, %arg8: memref<1x8x8x64xbf16, #tpu.memory_space<vmem>>) attributes {dimension_semantics = [#tpu.dimension_semantics<parallel>], iteration_bounds = array<i64: 2>, scalar_prefetch = 0 : i64, scratch_operands = 0 : i64, tpu.core_type = #tpu.core_type<tc>, window_params = [{transform_indices = @transform_0, window_bounds = array<i64: 1, 8, 8, 32>}, {pipeline_mode = #tpu.pipeline_mode<synchronous>, transform_indices = @transform_1, window_bounds = array<i64: 1, 32>}, {pipeline_mode = #tpu.pipeline_mode<synchronous>, transform_indices = @transform_2, window_bounds = array<i64: 1, 32>}, {pipeline_mode = #tpu.pipeline_mode<synchronous>, transform_indices = @transform_3, window_bounds = array<i64: 32, 32>}, {pipeline_mode = #tpu.pipeline_mode<synchronous>, transform_indices = @transform_4, window_bounds = array<i64: 32, 32>}, {pipeline_mode = #tpu.pipeline_mode<synchronous>, transform_indices = @transform_5, window_bounds = array<i64: 9, 32, 64>}, {pipeline_mode = #tpu.pipeline_mode<synchronous>, transform_indices = @transform_6, window_bounds = array<i64: 1, 64>}, {transform_indices = @transform_7, window_bounds = array<i64: 1, 8, 8, 64>}]} {
    %c0 = arith.constant 0 : index
    %c0_0 = arith.constant 0 : index
    %c0_1 = arith.constant 0 : index
    %c0_2 = arith.constant 0 : index
    %0 = vector.load %arg1[%c0, %c0_0, %c0_1, %c0_2] : memref<1x8x8x32xf32, #tpu.memory_space<vmem>>, vector<1x8x8x32xf32>
    %1 = vector.shape_cast %0 : vector<1x8x8x32xf32> to vector<64x32xf32>
    %c0_3 = arith.constant 0 : index
    %c0_4 = arith.constant 0 : index
    %2 = vector.load %arg2[%c0_3, %c0_4] : memref<1x32xf32, #tpu.memory_space<vmem>>, vector<1x32xf32>
    %c0_5 = arith.constant 0 : index
    %c0_6 = arith.constant 0 : index
    %3 = vector.load %arg3[%c0_5, %c0_6] : memref<1x32xf32, #tpu.memory_space<vmem>>, vector<1x32xf32>
    %c0_7 = arith.constant 0 : index
    %c0_8 = arith.constant 0 : index
    %4 = vector.load %arg4[%c0_7, %c0_8] : memref<32x32xf32, #tpu.memory_space<vmem>>, vector<32x32xf32>
    %c0_9 = arith.constant 0 : index
    %c0_10 = arith.constant 0 : index
    %5 = vector.load %arg5[%c0_9, %c0_10] : memref<32x32xf32, #tpu.memory_space<vmem>>, vector<32x32xf32>
    %cst = arith.constant dense<0.000000e+00> : vector<32xf32>
    %6 = vector.multi_reduction <add>, %1, %cst [0] : vector<64x32xf32> to vector<32xf32>
    %7 = vector.shape_cast %6 : vector<32xf32> to vector<1x32xf32>
    %cst_11 = arith.constant dense<0.000000e+00> : vector<1x32xf32>
    %8 = tpu.matmul %7, %4, %cst_11 {dimension_numbers = #tpu.dot_dimension_numbers<[1], [0], [0], [1], [0, 0, 1, 1], [], []>} : vector<1x32xf32>, vector<32x32xf32>, vector<1x32xf32> -> vector<1x32xf32>
    %cst_12 = arith.constant dense<0.000000e+00> : vector<1x32xf32>
    %9 = tpu.matmul %8, %5, %cst_12 {dimension_numbers = #tpu.dot_dimension_numbers<[1], [0], [0], [1], [0, 0, 1, 1], [], []>} : vector<1x32xf32>, vector<32x32xf32>, vector<1x32xf32> -> vector<1x32xf32>
    %10 = vector.broadcast %9 : vector<1x32xf32> to vector<64x32xf32>
    %11 = arith.subf %1, %10 : vector<64x32xf32>
    %12 = arith.mulf %11, %11 : vector<64x32xf32>
    %cst_13 = arith.constant dense<0.000000e+00> : vector<32xf32>
    %13 = vector.multi_reduction <add>, %12, %cst_13 [0] : vector<64x32xf32> to vector<32xf32>
    %14 = vector.shape_cast %13 : vector<32xf32> to vector<1x32xf32>
    %cst_14 = arith.constant dense<0.000000e+00> : vector<1x32xf32>
    %15 = tpu.matmul %14, %4, %cst_14 {dimension_numbers = #tpu.dot_dimension_numbers<[1], [0], [0], [1], [0, 0, 1, 1], [], []>} : vector<1x32xf32>, vector<32x32xf32>, vector<1x32xf32> -> vector<1x32xf32>
    %cst_15 = arith.constant dense<0.000000e+00> : vector<1x32xf32>
    %16 = tpu.matmul %15, %5, %cst_15 {dimension_numbers = #tpu.dot_dimension_numbers<[1], [0], [0], [1], [0, 0, 1, 1], [], []>} : vector<1x32xf32>, vector<32x32xf32>, vector<1x32xf32> -> vector<1x32xf32>
    %cst_16 = arith.constant 9.99999997E-7 : f32
    %17 = vector.broadcast %cst_16 : f32 to vector<1x32xf32>
    %18 = arith.addf %16, %17 : vector<1x32xf32>
    %19 = math.rsqrt %18 : vector<1x32xf32>
    %20 = arith.mulf %19, %2 : vector<1x32xf32>
    %21 = vector.broadcast %20 : vector<1x32xf32> to vector<64x32xf32>
    %22 = arith.mulf %11, %21 : vector<64x32xf32>
    %23 = vector.broadcast %3 : vector<1x32xf32> to vector<64x32xf32>
    %24 = arith.addf %22, %23 : vector<64x32xf32>
    %25 = arith.negf %24 : vector<64x32xf32>
    %26 = math.exp %25 : vector<64x32xf32>
    %cst_17 = arith.constant 1.000000e+00 : f32
    %27 = vector.broadcast %cst_17 : f32 to vector<64x32xf32>
    %28 = arith.addf %27, %26 : vector<64x32xf32>
    %29 = arith.divf %27, %28 : vector<64x32xf32>
    %30 = arith.mulf %24, %29 : vector<64x32xf32>
    %31 = tpu.iota {dimensions = array<i32: 0>} : vector<64x32xi32>
    %c7_i32 = arith.constant 7 : i32
    %32 = vector.broadcast %c7_i32 : i32 to vector<64x32xi32>
    %33 = arith.andi %31, %32 : vector<64x32xi32>
    %c8_i32 = arith.constant 8 : i32
    %34 = vector.broadcast %c8_i32 : i32 to vector<64x32xi32>
    %35 = arith.cmpi sge, %31, %34 : vector<64x32xi32>
    %c56_i32 = arith.constant 56 : i32
    %36 = vector.broadcast %c56_i32 : i32 to vector<64x32xi32>
    %37 = arith.cmpi slt, %31, %36 : vector<64x32xi32>
    %c1_i32 = arith.constant 1 : i32
    %38 = vector.broadcast %c1_i32 : i32 to vector<64x32xi32>
    %39 = arith.cmpi sge, %33, %38 : vector<64x32xi32>
    %c6_i32 = arith.constant 6 : i32
    %40 = vector.broadcast %c6_i32 : i32 to vector<64x32xi32>
    %41 = arith.cmpi sle, %33, %40 : vector<64x32xi32>
    %c9_i32 = arith.constant 9 : i32
    %42 = tpu.dynamic_rotate %30 by %c9_i32 dim 0 : vector<64x32xf32>, i32 -> vector<64x32xf32>
    %43 = arith.andi %35, %39 : vector<64x32xi1>
    %cst_18 = arith.constant 0.000000e+00 : f32
    %44 = vector.broadcast %cst_18 : f32 to vector<64x32xf32>
    %45 = arith.select %43, %42, %44 : vector<64x32xi1>, vector<64x32xf32>
    %46 = arith.truncf %45 : vector<64x32xf32> to vector<64x32xbf16>
    %c0_19 = arith.constant 0 : index
    %c0_20 = arith.constant 0 : index
    %c0_21 = arith.constant 0 : index
    %47 = vector.load %arg6[%c0_19, %c0_20, %c0_21] : memref<9x32x64xbf16, #tpu.memory_space<vmem>>, vector<1x32x64xbf16>
    %48 = vector.shape_cast %47 : vector<1x32x64xbf16> to vector<32x64xbf16>
    %cst_22 = arith.constant dense<0.000000e+00> : vector<64x64xf32>
    %49 = tpu.matmul %46, %48, %cst_22 {dimension_numbers = #tpu.dot_dimension_numbers<[1], [0], [0], [1], [0, 0, 1, 1], [], []>} : vector<64x32xbf16>, vector<32x64xbf16>, vector<64x64xf32> -> vector<64x64xf32>
    %c8_i32_23 = arith.constant 8 : i32
    %50 = tpu.dynamic_rotate %30 by %c8_i32_23 dim 0 : vector<64x32xf32>, i32 -> vector<64x32xf32>
    %cst_24 = arith.constant 0.000000e+00 : f32
    %51 = vector.broadcast %cst_24 : f32 to vector<64x32xf32>
    %52 = arith.select %35, %50, %51 : vector<64x32xi1>, vector<64x32xf32>
    %53 = arith.truncf %52 : vector<64x32xf32> to vector<64x32xbf16>
    %c1 = arith.constant 1 : index
    %c0_25 = arith.constant 0 : index
    %c0_26 = arith.constant 0 : index
    %54 = vector.load %arg6[%c1, %c0_25, %c0_26] : memref<9x32x64xbf16, #tpu.memory_space<vmem>>, vector<1x32x64xbf16>
    %55 = vector.shape_cast %54 : vector<1x32x64xbf16> to vector<32x64xbf16>
    %cst_27 = arith.constant dense<0.000000e+00> : vector<64x64xf32>
    %56 = tpu.matmul %53, %55, %cst_27 {dimension_numbers = #tpu.dot_dimension_numbers<[1], [0], [0], [1], [0, 0, 1, 1], [], []>} : vector<64x32xbf16>, vector<32x64xbf16>, vector<64x64xf32> -> vector<64x64xf32>
    %57 = arith.addf %49, %56 : vector<64x64xf32>
    %c7_i32_28 = arith.constant 7 : i32
    %58 = tpu.dynamic_rotate %30 by %c7_i32_28 dim 0 : vector<64x32xf32>, i32 -> vector<64x32xf32>
    %59 = arith.andi %35, %41 : vector<64x32xi1>
    %cst_29 = arith.constant 0.000000e+00 : f32
    %60 = vector.broadcast %cst_29 : f32 to vector<64x32xf32>
    %61 = arith.select %59, %58, %60 : vector<64x32xi1>, vector<64x32xf32>
    %62 = arith.truncf %61 : vector<64x32xf32> to vector<64x32xbf16>
    %c2 = arith.constant 2 : index
    %c0_30 = arith.constant 0 : index
    %c0_31 = arith.constant 0 : index
    %63 = vector.load %arg6[%c2, %c0_30, %c0_31] : memref<9x32x64xbf16, #tpu.memory_space<vmem>>, vector<1x32x64xbf16>
    %64 = vector.shape_cast %63 : vector<1x32x64xbf16> to vector<32x64xbf16>
    %cst_32 = arith.constant dense<0.000000e+00> : vector<64x64xf32>
    %65 = tpu.matmul %62, %64, %cst_32 {dimension_numbers = #tpu.dot_dimension_numbers<[1], [0], [0], [1], [0, 0, 1, 1], [], []>} : vector<64x32xbf16>, vector<32x64xbf16>, vector<64x64xf32> -> vector<64x64xf32>
    %66 = arith.addf %57, %65 : vector<64x64xf32>
    %c1_i32_33 = arith.constant 1 : i32
    %67 = tpu.dynamic_rotate %30 by %c1_i32_33 dim 0 : vector<64x32xf32>, i32 -> vector<64x32xf32>
    %cst_34 = arith.constant 0.000000e+00 : f32
    %68 = vector.broadcast %cst_34 : f32 to vector<64x32xf32>
    %69 = arith.select %39, %67, %68 : vector<64x32xi1>, vector<64x32xf32>
    %70 = arith.truncf %69 : vector<64x32xf32> to vector<64x32xbf16>
    %c3 = arith.constant 3 : index
    %c0_35 = arith.constant 0 : index
    %c0_36 = arith.constant 0 : index
    %71 = vector.load %arg6[%c3, %c0_35, %c0_36] : memref<9x32x64xbf16, #tpu.memory_space<vmem>>, vector<1x32x64xbf16>
    %72 = vector.shape_cast %71 : vector<1x32x64xbf16> to vector<32x64xbf16>
    %cst_37 = arith.constant dense<0.000000e+00> : vector<64x64xf32>
    %73 = tpu.matmul %70, %72, %cst_37 {dimension_numbers = #tpu.dot_dimension_numbers<[1], [0], [0], [1], [0, 0, 1, 1], [], []>} : vector<64x32xbf16>, vector<32x64xbf16>, vector<64x64xf32> -> vector<64x64xf32>
    %74 = arith.addf %66, %73 : vector<64x64xf32>
    %75 = arith.truncf %30 : vector<64x32xf32> to vector<64x32xbf16>
    %c4 = arith.constant 4 : index
    %c0_38 = arith.constant 0 : index
    %c0_39 = arith.constant 0 : index
    %76 = vector.load %arg6[%c4, %c0_38, %c0_39] : memref<9x32x64xbf16, #tpu.memory_space<vmem>>, vector<1x32x64xbf16>
    %77 = vector.shape_cast %76 : vector<1x32x64xbf16> to vector<32x64xbf16>
    %cst_40 = arith.constant dense<0.000000e+00> : vector<64x64xf32>
    %78 = tpu.matmul %75, %77, %cst_40 {dimension_numbers = #tpu.dot_dimension_numbers<[1], [0], [0], [1], [0, 0, 1, 1], [], []>} : vector<64x32xbf16>, vector<32x64xbf16>, vector<64x64xf32> -> vector<64x64xf32>
    %79 = arith.addf %74, %78 : vector<64x64xf32>
    %c63_i32 = arith.constant 63 : i32
    %80 = tpu.dynamic_rotate %30 by %c63_i32 dim 0 : vector<64x32xf32>, i32 -> vector<64x32xf32>
    %cst_41 = arith.constant 0.000000e+00 : f32
    %81 = vector.broadcast %cst_41 : f32 to vector<64x32xf32>
    %82 = arith.select %41, %80, %81 : vector<64x32xi1>, vector<64x32xf32>
    %83 = arith.truncf %82 : vector<64x32xf32> to vector<64x32xbf16>
    %c5 = arith.constant 5 : index
    %c0_42 = arith.constant 0 : index
    %c0_43 = arith.constant 0 : index
    %84 = vector.load %arg6[%c5, %c0_42, %c0_43] : memref<9x32x64xbf16, #tpu.memory_space<vmem>>, vector<1x32x64xbf16>
    %85 = vector.shape_cast %84 : vector<1x32x64xbf16> to vector<32x64xbf16>
    %cst_44 = arith.constant dense<0.000000e+00> : vector<64x64xf32>
    %86 = tpu.matmul %83, %85, %cst_44 {dimension_numbers = #tpu.dot_dimension_numbers<[1], [0], [0], [1], [0, 0, 1, 1], [], []>} : vector<64x32xbf16>, vector<32x64xbf16>, vector<64x64xf32> -> vector<64x64xf32>
    %87 = arith.addf %79, %86 : vector<64x64xf32>
    %c57_i32 = arith.constant 57 : i32
    %88 = tpu.dynamic_rotate %30 by %c57_i32 dim 0 : vector<64x32xf32>, i32 -> vector<64x32xf32>
    %89 = arith.andi %37, %39 : vector<64x32xi1>
    %cst_45 = arith.constant 0.000000e+00 : f32
    %90 = vector.broadcast %cst_45 : f32 to vector<64x32xf32>
    %91 = arith.select %89, %88, %90 : vector<64x32xi1>, vector<64x32xf32>
    %92 = arith.truncf %91 : vector<64x32xf32> to vector<64x32xbf16>
    %c6 = arith.constant 6 : index
    %c0_46 = arith.constant 0 : index
    %c0_47 = arith.constant 0 : index
    %93 = vector.load %arg6[%c6, %c0_46, %c0_47] : memref<9x32x64xbf16, #tpu.memory_space<vmem>>, vector<1x32x64xbf16>
    %94 = vector.shape_cast %93 : vector<1x32x64xbf16> to vector<32x64xbf16>
    %cst_48 = arith.constant dense<0.000000e+00> : vector<64x64xf32>
    %95 = tpu.matmul %92, %94, %cst_48 {dimension_numbers = #tpu.dot_dimension_numbers<[1], [0], [0], [1], [0, 0, 1, 1], [], []>} : vector<64x32xbf16>, vector<32x64xbf16>, vector<64x64xf32> -> vector<64x64xf32>
    %96 = arith.addf %87, %95 : vector<64x64xf32>
    %c56_i32_49 = arith.constant 56 : i32
    %97 = tpu.dynamic_rotate %30 by %c56_i32_49 dim 0 : vector<64x32xf32>, i32 -> vector<64x32xf32>
    %cst_50 = arith.constant 0.000000e+00 : f32
    %98 = vector.broadcast %cst_50 : f32 to vector<64x32xf32>
    %99 = arith.select %37, %97, %98 : vector<64x32xi1>, vector<64x32xf32>
    %100 = arith.truncf %99 : vector<64x32xf32> to vector<64x32xbf16>
    %c7 = arith.constant 7 : index
    %c0_51 = arith.constant 0 : index
    %c0_52 = arith.constant 0 : index
    %101 = vector.load %arg6[%c7, %c0_51, %c0_52] : memref<9x32x64xbf16, #tpu.memory_space<vmem>>, vector<1x32x64xbf16>
    %102 = vector.shape_cast %101 : vector<1x32x64xbf16> to vector<32x64xbf16>
    %cst_53 = arith.constant dense<0.000000e+00> : vector<64x64xf32>
    %103 = tpu.matmul %100, %102, %cst_53 {dimension_numbers = #tpu.dot_dimension_numbers<[1], [0], [0], [1], [0, 0, 1, 1], [], []>} : vector<64x32xbf16>, vector<32x64xbf16>, vector<64x64xf32> -> vector<64x64xf32>
    %104 = arith.addf %96, %103 : vector<64x64xf32>
    %c55_i32 = arith.constant 55 : i32
    %105 = tpu.dynamic_rotate %30 by %c55_i32 dim 0 : vector<64x32xf32>, i32 -> vector<64x32xf32>
    %106 = arith.andi %37, %41 : vector<64x32xi1>
    %cst_54 = arith.constant 0.000000e+00 : f32
    %107 = vector.broadcast %cst_54 : f32 to vector<64x32xf32>
    %108 = arith.select %106, %105, %107 : vector<64x32xi1>, vector<64x32xf32>
    %109 = arith.truncf %108 : vector<64x32xf32> to vector<64x32xbf16>
    %c8 = arith.constant 8 : index
    %c0_55 = arith.constant 0 : index
    %c0_56 = arith.constant 0 : index
    %110 = vector.load %arg6[%c8, %c0_55, %c0_56] : memref<9x32x64xbf16, #tpu.memory_space<vmem>>, vector<1x32x64xbf16>
    %111 = vector.shape_cast %110 : vector<1x32x64xbf16> to vector<32x64xbf16>
    %cst_57 = arith.constant dense<0.000000e+00> : vector<64x64xf32>
    %112 = tpu.matmul %109, %111, %cst_57 {dimension_numbers = #tpu.dot_dimension_numbers<[1], [0], [0], [1], [0, 0, 1, 1], [], []>} : vector<64x32xbf16>, vector<32x64xbf16>, vector<64x64xf32> -> vector<64x64xf32>
    %113 = arith.addf %104, %112 : vector<64x64xf32>
    %c0_58 = arith.constant 0 : index
    %c0_59 = arith.constant 0 : index
    %114 = vector.load %arg7[%c0_58, %c0_59] : memref<1x64xf32, #tpu.memory_space<vmem>>, vector<1x64xf32>
    %115 = vector.broadcast %114 : vector<1x64xf32> to vector<64x64xf32>
    %116 = arith.addf %113, %115 : vector<64x64xf32>
    %117 = vector.shape_cast %116 : vector<64x64xf32> to vector<1x8x8x64xf32>
    %118 = arith.truncf %117 : vector<1x8x8x64xf32> to vector<1x8x8x64xbf16>
    %c0_60 = arith.constant 0 : index
    %c0_61 = arith.constant 0 : index
    %c0_62 = arith.constant 0 : index
    %c0_63 = arith.constant 0 : index
    %119 = vector.load %arg8[%c0_60, %c0_61, %c0_62, %c0_63] : memref<1x8x8x64xbf16, #tpu.memory_space<vmem>>, vector<1x8x8x64xbf16>
    tpu.vector_store %arg8[%c0_60, %c0_61, %c0_62, %c0_63], %118 {strides = array<i32>} : memref<1x8x8x64xbf16, #tpu.memory_space<vmem>>, vector<1x8x8x64xbf16>,
    return
  }
  func.func @transform_0(%arg0: i32) -> (i32, i32, i32, i32) {
    %c0_i32 = arith.constant 0 : i32
    %c0_i32_0 = arith.constant 0 : i32
    %c0_i32_1 = arith.constant 0 : i32
    %c0_i32_2 = arith.constant 0 : i32
    return %arg0, %c0_i32, %c0_i32_0, %c0_i32_1 : i32, i32, i32, i32
  }
  func.func @transform_1(%arg0: i32) -> (i32, i32) {
    %c0_i32 = arith.constant 0 : i32
    %c0_i32_0 = arith.constant 0 : i32
    %c0_i32_1 = arith.constant 0 : i32
    return %c0_i32, %c0_i32_0 : i32, i32
  }
  func.func @transform_2(%arg0: i32) -> (i32, i32) {
    %c0_i32 = arith.constant 0 : i32
    %c0_i32_0 = arith.constant 0 : i32
    %c0_i32_1 = arith.constant 0 : i32
    return %c0_i32, %c0_i32_0 : i32, i32
  }
  func.func @transform_3(%arg0: i32) -> (i32, i32) {
    %c0_i32 = arith.constant 0 : i32
    %c0_i32_0 = arith.constant 0 : i32
    %c0_i32_1 = arith.constant 0 : i32
    return %c0_i32, %c0_i32_0 : i32, i32
  }
  func.func @transform_4(%arg0: i32) -> (i32, i32) {
    %c0_i32 = arith.constant 0 : i32
    %c0_i32_0 = arith.constant 0 : i32
    %c0_i32_1 = arith.constant 0 : i32
    return %c0_i32, %c0_i32_0 : i32, i32
  }
  func.func @transform_5(%arg0: i32) -> (i32, i32, i32) {
    %c0_i32 = arith.constant 0 : i32
    %c0_i32_0 = arith.constant 0 : i32
    %c0_i32_1 = arith.constant 0 : i32
    %c0_i32_2 = arith.constant 0 : i32
    return %c0_i32, %c0_i32_0, %c0_i32_1 : i32, i32, i32
  }
  func.func @transform_6(%arg0: i32) -> (i32, i32) {
    %c0_i32 = arith.constant 0 : i32
    %c0_i32_0 = arith.constant 0 : i32
    %c0_i32_1 = arith.constant 0 : i32
    return %c0_i32, %c0_i32_0 : i32, i32
  }
  func.func @transform_7(%arg0: i32) -> (i32, i32, i32, i32) {
    %c0_i32 = arith.constant 0 : i32
    %c0_i32_0 = arith.constant 0 : i32
    %c0_i32_1 = arith.constant 0 : i32
    %c0_i32_2 = arith.constant 0 : i32
    return %arg0, %c0_i32, %c0_i32_0, %c0_i32_1 : i32, i32, i32, i32
  }
}

module attributes {stable_mosaic.version = 11 : i64} {
  func.func @_gn_swish_conv2_res_kernel(%arg0: i32, %arg1: memref<1x8x8x64xbf16, #tpu.memory_space<vmem>>, %arg2: memref<1x64xf32, #tpu.memory_space<vmem>>, %arg3: memref<1x64xf32, #tpu.memory_space<vmem>>, %arg4: memref<64x32xf32, #tpu.memory_space<vmem>>, %arg5: memref<32x64xf32, #tpu.memory_space<vmem>>, %arg6: memref<9x64x64xbf16, #tpu.memory_space<vmem>>, %arg7: memref<1x64xf32, #tpu.memory_space<vmem>>, %arg8: memref<1x8x8x32xbf16, #tpu.memory_space<vmem>>, %arg9: memref<32x64xbf16, #tpu.memory_space<vmem>>, %arg10: memref<1x64xf32, #tpu.memory_space<vmem>>, %arg11: memref<1x8x8x64xf32, #tpu.memory_space<vmem>>) attributes {dimension_semantics = [#tpu.dimension_semantics<parallel>], iteration_bounds = array<i64: 2>, scalar_prefetch = 0 : i64, scratch_operands = 0 : i64, tpu.core_type = #tpu.core_type<tc>, window_params = [{transform_indices = @transform_0, window_bounds = array<i64: 1, 8, 8, 64>}, {pipeline_mode = #tpu.pipeline_mode<synchronous>, transform_indices = @transform_1, window_bounds = array<i64: 1, 64>}, {pipeline_mode = #tpu.pipeline_mode<synchronous>, transform_indices = @transform_2, window_bounds = array<i64: 1, 64>}, {pipeline_mode = #tpu.pipeline_mode<synchronous>, transform_indices = @transform_3, window_bounds = array<i64: 64, 32>}, {pipeline_mode = #tpu.pipeline_mode<synchronous>, transform_indices = @transform_4, window_bounds = array<i64: 32, 64>}, {pipeline_mode = #tpu.pipeline_mode<synchronous>, transform_indices = @transform_5, window_bounds = array<i64: 9, 64, 64>}, {pipeline_mode = #tpu.pipeline_mode<synchronous>, transform_indices = @transform_6, window_bounds = array<i64: 1, 64>}, {transform_indices = @transform_7, window_bounds = array<i64: 1, 8, 8, 32>}, {pipeline_mode = #tpu.pipeline_mode<synchronous>, transform_indices = @transform_8, window_bounds = array<i64: 32, 64>}, {pipeline_mode = #tpu.pipeline_mode<synchronous>, transform_indices = @transform_9, window_bounds = array<i64: 1, 64>}, {transform_indices = @transform_10, window_bounds = array<i64: 1, 8, 8, 64>}]} {
    %c0 = arith.constant 0 : index
    %c0_0 = arith.constant 0 : index
    %c0_1 = arith.constant 0 : index
    %c0_2 = arith.constant 0 : index
    %0 = vector.load %arg1[%c0, %c0_0, %c0_1, %c0_2] : memref<1x8x8x64xbf16, #tpu.memory_space<vmem>>, vector<1x8x8x64xbf16>
    %1 = arith.extf %0 : vector<1x8x8x64xbf16> to vector<1x8x8x64xf32>
    %2 = vector.shape_cast %1 : vector<1x8x8x64xf32> to vector<64x64xf32>
    %c0_3 = arith.constant 0 : index
    %c0_4 = arith.constant 0 : index
    %3 = vector.load %arg2[%c0_3, %c0_4] : memref<1x64xf32, #tpu.memory_space<vmem>>, vector<1x64xf32>
    %c0_5 = arith.constant 0 : index
    %c0_6 = arith.constant 0 : index
    %4 = vector.load %arg3[%c0_5, %c0_6] : memref<1x64xf32, #tpu.memory_space<vmem>>, vector<1x64xf32>
    %c0_7 = arith.constant 0 : index
    %c0_8 = arith.constant 0 : index
    %5 = vector.load %arg4[%c0_7, %c0_8] : memref<64x32xf32, #tpu.memory_space<vmem>>, vector<64x32xf32>
    %c0_9 = arith.constant 0 : index
    %c0_10 = arith.constant 0 : index
    %6 = vector.load %arg5[%c0_9, %c0_10] : memref<32x64xf32, #tpu.memory_space<vmem>>, vector<32x64xf32>
    %cst = arith.constant dense<0.000000e+00> : vector<64xf32>
    %7 = vector.multi_reduction <add>, %2, %cst [0] : vector<64x64xf32> to vector<64xf32>
    %8 = vector.shape_cast %7 : vector<64xf32> to vector<1x64xf32>
    %cst_11 = arith.constant dense<0.000000e+00> : vector<1x32xf32>
    %9 = tpu.matmul %8, %5, %cst_11 {dimension_numbers = #tpu.dot_dimension_numbers<[1], [0], [0], [1], [0, 0, 1, 1], [], []>} : vector<1x64xf32>, vector<64x32xf32>, vector<1x32xf32> -> vector<1x32xf32>
    %cst_12 = arith.constant dense<0.000000e+00> : vector<1x64xf32>
    %10 = tpu.matmul %9, %6, %cst_12 {dimension_numbers = #tpu.dot_dimension_numbers<[1], [0], [0], [1], [0, 0, 1, 1], [], []>} : vector<1x32xf32>, vector<32x64xf32>, vector<1x64xf32> -> vector<1x64xf32>
    %11 = vector.broadcast %10 : vector<1x64xf32> to vector<64x64xf32>
    %12 = arith.subf %2, %11 : vector<64x64xf32>
    %13 = arith.mulf %12, %12 : vector<64x64xf32>
    %cst_13 = arith.constant dense<0.000000e+00> : vector<64xf32>
    %14 = vector.multi_reduction <add>, %13, %cst_13 [0] : vector<64x64xf32> to vector<64xf32>
    %15 = vector.shape_cast %14 : vector<64xf32> to vector<1x64xf32>
    %cst_14 = arith.constant dense<0.000000e+00> : vector<1x32xf32>
    %16 = tpu.matmul %15, %5, %cst_14 {dimension_numbers = #tpu.dot_dimension_numbers<[1], [0], [0], [1], [0, 0, 1, 1], [], []>} : vector<1x64xf32>, vector<64x32xf32>, vector<1x32xf32> -> vector<1x32xf32>
    %cst_15 = arith.constant dense<0.000000e+00> : vector<1x64xf32>
    %17 = tpu.matmul %16, %6, %cst_15 {dimension_numbers = #tpu.dot_dimension_numbers<[1], [0], [0], [1], [0, 0, 1, 1], [], []>} : vector<1x32xf32>, vector<32x64xf32>, vector<1x64xf32> -> vector<1x64xf32>
    %cst_16 = arith.constant 9.99999997E-7 : f32
    %18 = vector.broadcast %cst_16 : f32 to vector<1x64xf32>
    %19 = arith.addf %17, %18 : vector<1x64xf32>
    %20 = math.rsqrt %19 : vector<1x64xf32>
    %21 = arith.mulf %20, %3 : vector<1x64xf32>
    %22 = vector.broadcast %21 : vector<1x64xf32> to vector<64x64xf32>
    %23 = arith.mulf %12, %22 : vector<64x64xf32>
    %24 = vector.broadcast %4 : vector<1x64xf32> to vector<64x64xf32>
    %25 = arith.addf %23, %24 : vector<64x64xf32>
    %26 = arith.negf %25 : vector<64x64xf32>
    %27 = math.exp %26 : vector<64x64xf32>
    %cst_17 = arith.constant 1.000000e+00 : f32
    %28 = vector.broadcast %cst_17 : f32 to vector<64x64xf32>
    %29 = arith.addf %28, %27 : vector<64x64xf32>
    %30 = arith.divf %28, %29 : vector<64x64xf32>
    %31 = arith.mulf %25, %30 : vector<64x64xf32>
    %32 = tpu.iota {dimensions = array<i32: 0>} : vector<64x64xi32>
    %c7_i32 = arith.constant 7 : i32
    %33 = vector.broadcast %c7_i32 : i32 to vector<64x64xi32>
    %34 = arith.andi %32, %33 : vector<64x64xi32>
    %c8_i32 = arith.constant 8 : i32
    %35 = vector.broadcast %c8_i32 : i32 to vector<64x64xi32>
    %36 = arith.cmpi sge, %32, %35 : vector<64x64xi32>
    %c56_i32 = arith.constant 56 : i32
    %37 = vector.broadcast %c56_i32 : i32 to vector<64x64xi32>
    %38 = arith.cmpi slt, %32, %37 : vector<64x64xi32>
    %c1_i32 = arith.constant 1 : i32
    %39 = vector.broadcast %c1_i32 : i32 to vector<64x64xi32>
    %40 = arith.cmpi sge, %34, %39 : vector<64x64xi32>
    %c6_i32 = arith.constant 6 : i32
    %41 = vector.broadcast %c6_i32 : i32 to vector<64x64xi32>
    %42 = arith.cmpi sle, %34, %41 : vector<64x64xi32>
    %c9_i32 = arith.constant 9 : i32
    %43 = tpu.dynamic_rotate %31 by %c9_i32 dim 0 : vector<64x64xf32>, i32 -> vector<64x64xf32>
    %44 = arith.andi %36, %40 : vector<64x64xi1>
    %cst_18 = arith.constant 0.000000e+00 : f32
    %45 = vector.broadcast %cst_18 : f32 to vector<64x64xf32>
    %46 = arith.select %44, %43, %45 : vector<64x64xi1>, vector<64x64xf32>
    %47 = arith.truncf %46 : vector<64x64xf32> to vector<64x64xbf16>
    %c0_19 = arith.constant 0 : index
    %c0_20 = arith.constant 0 : index
    %c0_21 = arith.constant 0 : index
    %48 = vector.load %arg6[%c0_19, %c0_20, %c0_21] : memref<9x64x64xbf16, #tpu.memory_space<vmem>>, vector<1x64x64xbf16>
    %49 = vector.shape_cast %48 : vector<1x64x64xbf16> to vector<64x64xbf16>
    %cst_22 = arith.constant dense<0.000000e+00> : vector<64x64xf32>
    %50 = tpu.matmul %47, %49, %cst_22 {dimension_numbers = #tpu.dot_dimension_numbers<[1], [0], [0], [1], [0, 0, 1, 1], [], []>} : vector<64x64xbf16>, vector<64x64xbf16>, vector<64x64xf32> -> vector<64x64xf32>
    %c8_i32_23 = arith.constant 8 : i32
    %51 = tpu.dynamic_rotate %31 by %c8_i32_23 dim 0 : vector<64x64xf32>, i32 -> vector<64x64xf32>
    %cst_24 = arith.constant 0.000000e+00 : f32
    %52 = vector.broadcast %cst_24 : f32 to vector<64x64xf32>
    %53 = arith.select %36, %51, %52 : vector<64x64xi1>, vector<64x64xf32>
    %54 = arith.truncf %53 : vector<64x64xf32> to vector<64x64xbf16>
    %c1 = arith.constant 1 : index
    %c0_25 = arith.constant 0 : index
    %c0_26 = arith.constant 0 : index
    %55 = vector.load %arg6[%c1, %c0_25, %c0_26] : memref<9x64x64xbf16, #tpu.memory_space<vmem>>, vector<1x64x64xbf16>
    %56 = vector.shape_cast %55 : vector<1x64x64xbf16> to vector<64x64xbf16>
    %cst_27 = arith.constant dense<0.000000e+00> : vector<64x64xf32>
    %57 = tpu.matmul %54, %56, %cst_27 {dimension_numbers = #tpu.dot_dimension_numbers<[1], [0], [0], [1], [0, 0, 1, 1], [], []>} : vector<64x64xbf16>, vector<64x64xbf16>, vector<64x64xf32> -> vector<64x64xf32>
    %58 = arith.addf %50, %57 : vector<64x64xf32>
    %c7_i32_28 = arith.constant 7 : i32
    %59 = tpu.dynamic_rotate %31 by %c7_i32_28 dim 0 : vector<64x64xf32>, i32 -> vector<64x64xf32>
    %60 = arith.andi %36, %42 : vector<64x64xi1>
    %cst_29 = arith.constant 0.000000e+00 : f32
    %61 = vector.broadcast %cst_29 : f32 to vector<64x64xf32>
    %62 = arith.select %60, %59, %61 : vector<64x64xi1>, vector<64x64xf32>
    %63 = arith.truncf %62 : vector<64x64xf32> to vector<64x64xbf16>
    %c2 = arith.constant 2 : index
    %c0_30 = arith.constant 0 : index
    %c0_31 = arith.constant 0 : index
    %64 = vector.load %arg6[%c2, %c0_30, %c0_31] : memref<9x64x64xbf16, #tpu.memory_space<vmem>>, vector<1x64x64xbf16>
    %65 = vector.shape_cast %64 : vector<1x64x64xbf16> to vector<64x64xbf16>
    %cst_32 = arith.constant dense<0.000000e+00> : vector<64x64xf32>
    %66 = tpu.matmul %63, %65, %cst_32 {dimension_numbers = #tpu.dot_dimension_numbers<[1], [0], [0], [1], [0, 0, 1, 1], [], []>} : vector<64x64xbf16>, vector<64x64xbf16>, vector<64x64xf32> -> vector<64x64xf32>
    %67 = arith.addf %58, %66 : vector<64x64xf32>
    %c1_i32_33 = arith.constant 1 : i32
    %68 = tpu.dynamic_rotate %31 by %c1_i32_33 dim 0 : vector<64x64xf32>, i32 -> vector<64x64xf32>
    %cst_34 = arith.constant 0.000000e+00 : f32
    %69 = vector.broadcast %cst_34 : f32 to vector<64x64xf32>
    %70 = arith.select %40, %68, %69 : vector<64x64xi1>, vector<64x64xf32>
    %71 = arith.truncf %70 : vector<64x64xf32> to vector<64x64xbf16>
    %c3 = arith.constant 3 : index
    %c0_35 = arith.constant 0 : index
    %c0_36 = arith.constant 0 : index
    %72 = vector.load %arg6[%c3, %c0_35, %c0_36] : memref<9x64x64xbf16, #tpu.memory_space<vmem>>, vector<1x64x64xbf16>
    %73 = vector.shape_cast %72 : vector<1x64x64xbf16> to vector<64x64xbf16>
    %cst_37 = arith.constant dense<0.000000e+00> : vector<64x64xf32>
    %74 = tpu.matmul %71, %73, %cst_37 {dimension_numbers = #tpu.dot_dimension_numbers<[1], [0], [0], [1], [0, 0, 1, 1], [], []>} : vector<64x64xbf16>, vector<64x64xbf16>, vector<64x64xf32> -> vector<64x64xf32>
    %75 = arith.addf %67, %74 : vector<64x64xf32>
    %76 = arith.truncf %31 : vector<64x64xf32> to vector<64x64xbf16>
    %c4 = arith.constant 4 : index
    %c0_38 = arith.constant 0 : index
    %c0_39 = arith.constant 0 : index
    %77 = vector.load %arg6[%c4, %c0_38, %c0_39] : memref<9x64x64xbf16, #tpu.memory_space<vmem>>, vector<1x64x64xbf16>
    %78 = vector.shape_cast %77 : vector<1x64x64xbf16> to vector<64x64xbf16>
    %cst_40 = arith.constant dense<0.000000e+00> : vector<64x64xf32>
    %79 = tpu.matmul %76, %78, %cst_40 {dimension_numbers = #tpu.dot_dimension_numbers<[1], [0], [0], [1], [0, 0, 1, 1], [], []>} : vector<64x64xbf16>, vector<64x64xbf16>, vector<64x64xf32> -> vector<64x64xf32>
    %80 = arith.addf %75, %79 : vector<64x64xf32>
    %c63_i32 = arith.constant 63 : i32
    %81 = tpu.dynamic_rotate %31 by %c63_i32 dim 0 : vector<64x64xf32>, i32 -> vector<64x64xf32>
    %cst_41 = arith.constant 0.000000e+00 : f32
    %82 = vector.broadcast %cst_41 : f32 to vector<64x64xf32>
    %83 = arith.select %42, %81, %82 : vector<64x64xi1>, vector<64x64xf32>
    %84 = arith.truncf %83 : vector<64x64xf32> to vector<64x64xbf16>
    %c5 = arith.constant 5 : index
    %c0_42 = arith.constant 0 : index
    %c0_43 = arith.constant 0 : index
    %85 = vector.load %arg6[%c5, %c0_42, %c0_43] : memref<9x64x64xbf16, #tpu.memory_space<vmem>>, vector<1x64x64xbf16>
    %86 = vector.shape_cast %85 : vector<1x64x64xbf16> to vector<64x64xbf16>
    %cst_44 = arith.constant dense<0.000000e+00> : vector<64x64xf32>
    %87 = tpu.matmul %84, %86, %cst_44 {dimension_numbers = #tpu.dot_dimension_numbers<[1], [0], [0], [1], [0, 0, 1, 1], [], []>} : vector<64x64xbf16>, vector<64x64xbf16>, vector<64x64xf32> -> vector<64x64xf32>
    %88 = arith.addf %80, %87 : vector<64x64xf32>
    %c57_i32 = arith.constant 57 : i32
    %89 = tpu.dynamic_rotate %31 by %c57_i32 dim 0 : vector<64x64xf32>, i32 -> vector<64x64xf32>
    %90 = arith.andi %38, %40 : vector<64x64xi1>
    %cst_45 = arith.constant 0.000000e+00 : f32
    %91 = vector.broadcast %cst_45 : f32 to vector<64x64xf32>
    %92 = arith.select %90, %89, %91 : vector<64x64xi1>, vector<64x64xf32>
    %93 = arith.truncf %92 : vector<64x64xf32> to vector<64x64xbf16>
    %c6 = arith.constant 6 : index
    %c0_46 = arith.constant 0 : index
    %c0_47 = arith.constant 0 : index
    %94 = vector.load %arg6[%c6, %c0_46, %c0_47] : memref<9x64x64xbf16, #tpu.memory_space<vmem>>, vector<1x64x64xbf16>
    %95 = vector.shape_cast %94 : vector<1x64x64xbf16> to vector<64x64xbf16>
    %cst_48 = arith.constant dense<0.000000e+00> : vector<64x64xf32>
    %96 = tpu.matmul %93, %95, %cst_48 {dimension_numbers = #tpu.dot_dimension_numbers<[1], [0], [0], [1], [0, 0, 1, 1], [], []>} : vector<64x64xbf16>, vector<64x64xbf16>, vector<64x64xf32> -> vector<64x64xf32>
    %97 = arith.addf %88, %96 : vector<64x64xf32>
    %c56_i32_49 = arith.constant 56 : i32
    %98 = tpu.dynamic_rotate %31 by %c56_i32_49 dim 0 : vector<64x64xf32>, i32 -> vector<64x64xf32>
    %cst_50 = arith.constant 0.000000e+00 : f32
    %99 = vector.broadcast %cst_50 : f32 to vector<64x64xf32>
    %100 = arith.select %38, %98, %99 : vector<64x64xi1>, vector<64x64xf32>
    %101 = arith.truncf %100 : vector<64x64xf32> to vector<64x64xbf16>
    %c7 = arith.constant 7 : index
    %c0_51 = arith.constant 0 : index
    %c0_52 = arith.constant 0 : index
    %102 = vector.load %arg6[%c7, %c0_51, %c0_52] : memref<9x64x64xbf16, #tpu.memory_space<vmem>>, vector<1x64x64xbf16>
    %103 = vector.shape_cast %102 : vector<1x64x64xbf16> to vector<64x64xbf16>
    %cst_53 = arith.constant dense<0.000000e+00> : vector<64x64xf32>
    %104 = tpu.matmul %101, %103, %cst_53 {dimension_numbers = #tpu.dot_dimension_numbers<[1], [0], [0], [1], [0, 0, 1, 1], [], []>} : vector<64x64xbf16>, vector<64x64xbf16>, vector<64x64xf32> -> vector<64x64xf32>
    %105 = arith.addf %97, %104 : vector<64x64xf32>
    %c55_i32 = arith.constant 55 : i32
    %106 = tpu.dynamic_rotate %31 by %c55_i32 dim 0 : vector<64x64xf32>, i32 -> vector<64x64xf32>
    %107 = arith.andi %38, %42 : vector<64x64xi1>
    %cst_54 = arith.constant 0.000000e+00 : f32
    %108 = vector.broadcast %cst_54 : f32 to vector<64x64xf32>
    %109 = arith.select %107, %106, %108 : vector<64x64xi1>, vector<64x64xf32>
    %110 = arith.truncf %109 : vector<64x64xf32> to vector<64x64xbf16>
    %c8 = arith.constant 8 : index
    %c0_55 = arith.constant 0 : index
    %c0_56 = arith.constant 0 : index
    %111 = vector.load %arg6[%c8, %c0_55, %c0_56] : memref<9x64x64xbf16, #tpu.memory_space<vmem>>, vector<1x64x64xbf16>
    %112 = vector.shape_cast %111 : vector<1x64x64xbf16> to vector<64x64xbf16>
    %cst_57 = arith.constant dense<0.000000e+00> : vector<64x64xf32>
    %113 = tpu.matmul %110, %112, %cst_57 {dimension_numbers = #tpu.dot_dimension_numbers<[1], [0], [0], [1], [0, 0, 1, 1], [], []>} : vector<64x64xbf16>, vector<64x64xbf16>, vector<64x64xf32> -> vector<64x64xf32>
    %114 = arith.addf %105, %113 : vector<64x64xf32>
    %c0_58 = arith.constant 0 : index
    %c0_59 = arith.constant 0 : index
    %115 = vector.load %arg7[%c0_58, %c0_59] : memref<1x64xf32, #tpu.memory_space<vmem>>, vector<1x64xf32>
    %116 = vector.broadcast %115 : vector<1x64xf32> to vector<64x64xf32>
    %117 = arith.addf %114, %116 : vector<64x64xf32>
    %c0_60 = arith.constant 0 : index
    %c0_61 = arith.constant 0 : index
    %c0_62 = arith.constant 0 : index
    %c0_63 = arith.constant 0 : index
    %118 = vector.load %arg8[%c0_60, %c0_61, %c0_62, %c0_63] : memref<1x8x8x32xbf16, #tpu.memory_space<vmem>>, vector<1x8x8x32xbf16>
    %119 = vector.shape_cast %118 : vector<1x8x8x32xbf16> to vector<64x32xbf16>
    %c0_64 = arith.constant 0 : index
    %c0_65 = arith.constant 0 : index
    %120 = vector.load %arg9[%c0_64, %c0_65] : memref<32x64xbf16, #tpu.memory_space<vmem>>, vector<32x64xbf16>
    %cst_66 = arith.constant dense<0.000000e+00> : vector<64x64xf32>
    %121 = tpu.matmul %119, %120, %cst_66 {dimension_numbers = #tpu.dot_dimension_numbers<[1], [0], [0], [1], [0, 0, 1, 1], [], []>} : vector<64x32xbf16>, vector<32x64xbf16>, vector<64x64xf32> -> vector<64x64xf32>
    %c0_67 = arith.constant 0 : index
    %c0_68 = arith.constant 0 : index
    %122 = vector.load %arg10[%c0_67, %c0_68] : memref<1x64xf32, #tpu.memory_space<vmem>>, vector<1x64xf32>
    %123 = vector.broadcast %122 : vector<1x64xf32> to vector<64x64xf32>
    %124 = arith.addf %121, %123 : vector<64x64xf32>
    %125 = arith.addf %117, %124 : vector<64x64xf32>
    %126 = vector.shape_cast %125 : vector<64x64xf32> to vector<1x8x8x64xf32>
    %c0_69 = arith.constant 0 : index
    %c0_70 = arith.constant 0 : index
    %c0_71 = arith.constant 0 : index
    %c0_72 = arith.constant 0 : index
    %127 = vector.load %arg11[%c0_69, %c0_70, %c0_71, %c0_72] : memref<1x8x8x64xf32, #tpu.memory_space<vmem>>, vector<1x8x8x64xf32>
    tpu.vector_store %arg11[%c0_69, %c0_70, %c0_71, %c0_72], %126 {strides = array<i32>} : memref<1x8x8x64xf32, #tpu.memory_space<vmem>>, vector<1x8x8x64xf32>,
    return
  }
  func.func @transform_0(%arg0: i32) -> (i32, i32, i32, i32) {
    %c0_i32 = arith.constant 0 : i32
    %c0_i32_0 = arith.constant 0 : i32
    %c0_i32_1 = arith.constant 0 : i32
    %c0_i32_2 = arith.constant 0 : i32
    return %arg0, %c0_i32, %c0_i32_0, %c0_i32_1 : i32, i32, i32, i32
  }
  func.func @transform_1(%arg0: i32) -> (i32, i32) {
    %c0_i32 = arith.constant 0 : i32
    %c0_i32_0 = arith.constant 0 : i32
    %c0_i32_1 = arith.constant 0 : i32
    return %c0_i32, %c0_i32_0 : i32, i32
  }
  func.func @transform_2(%arg0: i32) -> (i32, i32) {
    %c0_i32 = arith.constant 0 : i32
    %c0_i32_0 = arith.constant 0 : i32
    %c0_i32_1 = arith.constant 0 : i32
    return %c0_i32, %c0_i32_0 : i32, i32
  }
  func.func @transform_3(%arg0: i32) -> (i32, i32) {
    %c0_i32 = arith.constant 0 : i32
    %c0_i32_0 = arith.constant 0 : i32
    %c0_i32_1 = arith.constant 0 : i32
    return %c0_i32, %c0_i32_0 : i32, i32
  }
  func.func @transform_4(%arg0: i32) -> (i32, i32) {
    %c0_i32 = arith.constant 0 : i32
    %c0_i32_0 = arith.constant 0 : i32
    %c0_i32_1 = arith.constant 0 : i32
    return %c0_i32, %c0_i32_0 : i32, i32
  }
  func.func @transform_5(%arg0: i32) -> (i32, i32, i32) {
    %c0_i32 = arith.constant 0 : i32
    %c0_i32_0 = arith.constant 0 : i32
    %c0_i32_1 = arith.constant 0 : i32
    %c0_i32_2 = arith.constant 0 : i32
    return %c0_i32, %c0_i32_0, %c0_i32_1 : i32, i32, i32
  }
  func.func @transform_6(%arg0: i32) -> (i32, i32) {
    %c0_i32 = arith.constant 0 : i32
    %c0_i32_0 = arith.constant 0 : i32
    %c0_i32_1 = arith.constant 0 : i32
    return %c0_i32, %c0_i32_0 : i32, i32
  }
  func.func @transform_7(%arg0: i32) -> (i32, i32, i32, i32) {
    %c0_i32 = arith.constant 0 : i32
    %c0_i32_0 = arith.constant 0 : i32
    %c0_i32_1 = arith.constant 0 : i32
    %c0_i32_2 = arith.constant 0 : i32
    return %arg0, %c0_i32, %c0_i32_0, %c0_i32_1 : i32, i32, i32, i32
  }
  func.func @transform_8(%arg0: i32) -> (i32, i32) {
    %c0_i32 = arith.constant 0 : i32
    %c0_i32_0 = arith.constant 0 : i32
    %c0_i32_1 = arith.constant 0 : i32
    return %c0_i32, %c0_i32_0 : i32, i32
  }
  func.func @transform_9(%arg0: i32) -> (i32, i32) {
    %c0_i32 = arith.constant 0 : i32
    %c0_i32_0 = arith.constant 0 : i32
    %c0_i32_1 = arith.constant 0 : i32
    return %c0_i32, %c0_i32_0 : i32, i32
  }
  func.func @transform_10(%arg0: i32) -> (i32, i32, i32, i32) {
    %c0_i32 = arith.constant 0 : i32
    %c0_i32_0 = arith.constant 0 : i32
    %c0_i32_1 = arith.constant 0 : i32
    %c0_i32_2 = arith.constant 0 : i32
    return %arg0, %c0_i32, %c0_i32_0, %c0_i32_1 : i32, i32, i32, i32
  }
}

</mosaic_0001>

<bundles_post_ra>
// kernel: resnet_block_nchw.2
= control target key start
LH: loop header
LB: loop body
LE: loop exit
PB: predicated region body
PF: predicated region fallthrough
CT: control target
= control target key end

     0   :  { %s2481_s24 = smov 0   ;;  %s3114_s0 = inlined_call_operand.vmem [shape: f32[2,8,8,32], index: 0, kind: input, shape index: {}]   ;;  %s3115_s1 = inlined_call_operand.vmem [shape: f32[1,32], index: 1, kind: input, shape index: {}]   ;;  %s3116_s2 = inlined_call_operand.vmem [shape: f32[1,32], index: 2, kind: input, shape index: {}]   ;;  %s3117_s3 = inlined_call_operand.vmem [shape: f32[32,32], index: 3, kind: input, shape index: {}]   ;;  %s3118_s4 = inlined_call_operand.vmem [shape: f32[32,32], index: 4, kind: input, shape index: {}]   ;;  %s3119_s5 = inlined_call_operand.vmem [shape: bf16[9,32,64], index: 5, kind: input, shape index: {}]   ;;  %s3120_s6 = inlined_call_operand.vmem [shape: f32[1,64], index: 6, kind: input, shape index: {}]   ;;  %s3121_s7 = inlined_call_operand.vmem [shape: bf16[2,8,8,64], index: 7, kind: output, shape index: {}]  }
   0x1 LB: > { %s1940_s25 = sadd.s32 4294967295, %s2436_s24   ;;  %p1944_p0 = scmp.ge.s32.totalorder %s2436_s24, 1  ;;  %s2436_s24 = sphi %s2481_s24, %s17_s24  }
   0x2   : > { %p237_p1 = scmp.lt.s32.totalorder %s2436_s24, 3 }
   0x4   : > { %p238_p2 = pnand %p1944_p0, %p237_p1 }
   0x5   : > { %v290_v0 = vld [vmem:[%s3117_s3] sm:$0xff] (!%p238_p2)  ;;  %v291_v1 = vld [vmem:[%s3117_s3 + $0x8] sm:$0xff] (!%p238_p2)  ;;  %v292_v2 = vld [vmem:[%s3117_s3 + $0x10] sm:$0xff] (!%p238_p2)  ;;  %v2438_v3 = vmov (!%p238_p2), 0.0|0.0   ;;  %vm2439_vm0 = vmmov (!%p238_p2), 0   ;;  %v2440_v6 = vmov (!%p238_p2), 0.0   ;;  %v466_v45 = vlaneseq (!%p238_p2) }
   0x6   : > { %241 = sbr.rel (%p238_p2) target bundleno = 1273 (0x4f9), region = 48  ;;  %2279 = vmatprep.subr.bf16.mxu1 (!%p238_p2), %v2438_v3  ;;  %v2280_v4 = vpack.c.bf16 (!%p238_p2), %v291_v1, %v290_v0  ;;  %v293_v5 = vld [vmem:[%s3117_s3 + $0x18] sm:$0xff] (!%p238_p2)  ;;  %2135 = vmatprep.mubr.msk.f32.mxu1 (!%p238_p2), %vm2439_vm0, %v2440_v6  ;;  %p269_p3 = scmp.lt.s32.totalorder (!%p238_p2), %s1940_s25, 1  ;;  %vm298_vm1 = vcmask (!%p238_p2), 261120   ;;  %v294_v35 = vld [vmem:[%s3118_s4] sm:$0xff] (!%p238_p2)  ;;  %v295_v36 = vld [vmem:[%s3118_s4 + $0x8] sm:$0xff] (!%p238_p2) }
   0x7   : > { %2291 = vmatprep.subr.bf16.mxu0 (!%p238_p2), %v2438_v3  ;;  %2157 = vmatprep.mubr.msk.f32.mxu0 (!%p238_p2), %vm2439_vm0, %v2440_v6  ;;  %v2283_v7 = vpack.c.bf16 (!%p238_p2), %v293_v5, %v292_v2  ;;  %v2286_v38 = vpack.c.bf16 (!%p238_p2), %v295_v36, %v294_v35  ;;  %v296_v40 = vld [vmem:[%s3118_s4 + $0x10] sm:$0xff] (!%p238_p2)  ;;  %v297_v41 = vld [vmem:[%s3118_s4 + $0x18] sm:$0xff] (!%p238_p2)  ;;  %v2545_v46 = vshrl.u32 (!%p238_p2), %v466_v45, 7  ;;  %v288_v36 = vld [vmem:[%s3115_s1] sm:$0x1] (!%p238_p2) }
   0x8   : > { %2281 = vmatpush3.bf16.msra.mxu1 (!%p238_p2), %v2280_v4  ;;  %2293 = vmatpush3.bf16.msra.mxu0 (!%p238_p2), %v2280_v4  ;;  %v2289_v42 = vpack.c.bf16 (!%p238_p2), %v297_v41, %v296_v40  ;;  %v1953_v40 = vld [vmem:[%s3116_s2] ss:$0 sm:$0xff] (!%p238_p2) }
   0x9   : > { %2282 = vmatprep.subr.bf16.mxu1 (!%p238_p2), %v2438_v3  ;;  %2294 = vmatprep.subr.bf16.mxu0 (!%p238_p2), %v2438_v3  ;;  %v468_v47 = vsub.s32 (!%p238_p2), 0, %v2545_v46  ;;  %vm3126_vm2 = vcmp.lt.s32.totalorder (!%p238_p2), %v2545_v46, 1  ;;  %vm3122_vm3 = vcmp.lt.s32.totalorder (!%p238_p2), %v2545_v46, 7 }
   0xc   : > { %2284 = vmatpush3.bf16.msra.mxu1 (!%p238_p2), %v2283_v7  ;;  %2296 = vmatpush3.bf16.msra.mxu0 (!%p238_p2), %v2283_v7 }
   0xd   : > { %s3170_s25 = smov (!%p269_p3, %s1940_s25), 1  ;;  %2285 = vmatprep.subr.bf16.mxu1 %v2438_v3 }
   0xe   : > { %s2051_s11 = sshll.u32 %s3170_s25, 6  ;;  %s2052_s23 = sshll.u32 %s3170_s25, 5 }
   0xf   : > { %s273_s14 = scalar_lea.vmem %s3114_s0, %s2051_s11  ;;  %s3093_s28 = scalar_lea.vmem %s3121_s7, %s2052_s23 }
  0x10   : > { %v280_v8 = vld [vmem:[%s273_s14] sm:$0xff]  ;;  %v281_v9 = vld [vmem:[%s273_s14 + $0x8] sm:$0xff]  ;;  %v282_v10 = vld [vmem:[%s273_s14 + $0x10] sm:$0xff] }
  0x11   : > { %v283_v11 = vld [vmem:[%s273_s14 + $0x18] sm:$0xff]  ;;  %v284_v12 = vld [vmem:[%s273_s14 + $0x20] sm:$0xff]  ;;  %v285_v13 = vld [vmem:[%s273_s14 + $0x28] sm:$0xff]  ;;  %v299_v14 = vsel %vm298_vm1, %v280_v8, 0.0  ;;  %v300_v15 = vsel %vm298_vm1, %v281_v9, 0.0  ;;  %v302_v16 = vsel %vm298_vm1, %v282_v10, 0.0 }
  0x12   : > { %v286_v17 = vld [vmem:[%s273_s14 + $0x30] sm:$0xff]  ;;  %v301_v18 = vadd.f32 %v300_v15, %v299_v14  ;;  %v304_v19 = vsel %vm298_vm1, %v283_v11, 0.0  ;;  %v306_v20 = vsel %vm298_vm1, %v284_v12, 0.0  ;;  %v308_v21 = vsel %vm298_vm1, %v285_v13, 0.0  ;;  %v287_v24 = vld [vmem:[%s273_s14 + $0x38] sm:$0xff] }
  0x13   : > { %v310_v22 = vsel %vm298_vm1, %v286_v17, 0.0  ;;  %v312_v28 = vsel %vm298_vm1, %v287_v24, 0.0 }
  0x14   : > { %v303_v23 = vadd.f32 %v302_v16, %v301_v18 }
  0x16   : > { %v305_v25 = vadd.f32 %v304_v19, %v303_v23 }
  0x18   : > { %v307_v26 = vadd.f32 %v306_v20, %v305_v25 }
  0x1a   : > { %v309_v27 = vadd.f32 %v308_v21, %v307_v26 }
  0x1c   : > { %v311_v29 = vadd.f32 %v310_v22, %v309_v27  ;;  %v2378_v27 = vld [vmem:[%s3119_s5 + $0x40] sm:$0xff]  }
  0x1d   : > { %2219 = vmatprep.subr.bf16.mxu0 %v2378_v27 }
  0x1e   : > { %v313_v30 = vadd.f32 %v312_v28, %v311_v29  ;;  %v2379_v28 = vld [vmem:[%s3119_s5 + $0x10] sm:$0xff]   ;;  %v2380_v29 = vld [vmem:[%s3119_s5 + $0x48] sm:$0xff]  }
  0x20   : > { %v314_v31 = vrot.slane %v313_v30, 4 }
  0x22   : > { %v315_v32 = vadd.f32 %v314_v31, %v313_v30  ;;  %v2381_v30 = vld [vmem:[%s3119_s5 + $0x18] sm:$0xff]   ;;  %v2599_v31 = vld [vmem:[%s3119_s5 + $0x50] sm:$0xff]  }
  0x24   : > { %v316_v33 = vrot.slane %v315_v32, 2 }
  0x26   : > { %v317_v34 = vadd.f32 %v316_v33, %v315_v32  ;;  %v2605_v32 = vld [vmem:[%s3119_s5] sm:$0xff]  }
  0x28   : > { %v318_v37 = vrot.slane %v317_v34, 1 }
  0x2a   : > { %v319_v39 = vadd.f32 %v318_v37, %v317_v34 }
  0x2c   : > { %2136 = vmatmul.mubr.msk.f32.vlgmr.msra.gmra.mrb[0].mxu1 %vm298_vm1, %v319_v39 }
  0x2d   : > { %2287 = vmatpush3.bf16.msra.mxu1 %v2286_v38  ;;  %2146 = vmatprep.mubr.msk.f32.mxu1 %vm2439_vm0, %v2440_v6 }
  0x2e   : > { %2288 = vmatprep.subr.bf16.mxu1 %v2438_v3 }
  0x31   : > { %2290 = vmatpush3.bf16.msra.mxu1 %v2289_v42 }
  0x32   : > { %2297 = vmatprep.subr.bf16.mxu1 %v2438_v3 }
  0xff   : > { %v389_v43 = vpop.f32.mrb[0].mxu1 }
 0x100   : > { %v2137_v44 = vpop.f32.mrb[1].mxu1  ;;  %2147 = vmatmul.mubr.msk.f32.vlgmr.msra.gmra.mrb[2].mxu1 %vm298_vm1, %v389_v43 }
 0x101   : > { %2299 = vmatpush3.bf16.msra.mxu1 %v2286_v38  ;;  %2168 = vmatprep.mubr.msk.f32.mxu1 %vm2439_vm0, %v2440_v6 }
 0x102   : > { %2300 = vmatprep.subr.bf16.mxu1 %v2438_v3 }
 0x105   : > { %2302 = vmatpush3.bf16.msra.mxu1 %v2289_v42 }
 0x106   : > { %2171 = vmatprep.subr.bf16.mxu1 %v2379_v28 }
 0x1d3   : > { %v462_v48 = vpop.f32.mrb[2].mxu1 }
 0x1d4   : > { %v469_v49 = vrot.slane %v462_v48, %v468_v47  ;;  %v2148_v50 = vpop.f32.mrb[3].mxu1 }
 0x1d6   : > { %v2550_v51 = vsub.f32 %v280_v8, %v469_v49  ;;  %v2552_v52 = vsub.f32 %v281_v9, %v469_v49  ;;  %v2554_v53 = vsub.f32 %v282_v10, %v469_v49  ;;  %v2556_v54 = vsub.f32 %v283_v11, %v469_v49 }
 0x1d7   : > { %v2558_v55 = vsub.f32 %v284_v12, %v469_v49  ;;  %v2566_v59 = vsub.f32 %v285_v13, %v469_v49  ;;  %v476_v0 = vsub.f32 %v286_v17, %v469_v49  ;;  %v477_v4 = vsub.f32 %v287_v24, %v469_v49 }
 0x1d8   : > { %v478_v56 = vmul.f32 %v2550_v51, %v2550_v51  ;;  %v479_v57 = vmul.f32 %v2552_v52, %v2552_v52  ;;  %v480_v58 = vmul.f32 %v2554_v53, %v2554_v53  ;;  %v481_v60 = vmul.f32 %v2556_v54, %v2556_v54 }
 0x1d9   : > { %v482_v1 = vmul.f32 %v2558_v55, %v2558_v55  ;;  %v483_v5 = vmul.f32 %v2566_v59, %v2566_v59  ;;  %v484_v9 = vmul.f32 %v476_v0, %v476_v0  ;;  %v485_v12 = vmul.f32 %v477_v4, %v477_v4 }
 0x1da   : > { %v486_v61 = vsel %vm298_vm1, %v478_v56, 0.0  ;;  %v487_v62 = vsel %vm298_vm1, %v479_v57, 0.0  ;;  %v489_v2 = vsel %vm298_vm1, %v480_v58, 0.0  ;;  %v491_v7 = vsel %vm298_vm1, %v481_v60, 0.0 }
 0x1db   : > { %v488_v63 = vadd.f32 %v487_v62, %v486_v61  ;;  %v493_v10 = vsel %vm298_vm1, %v482_v1, 0.0  ;;  %v495_v13 = vsel %vm298_vm1, %v483_v5, 0.0  ;;  %v497_v15 = vsel %vm298_vm1, %v484_v9, 0.0 }
 0x1dc   : > { %v499_v17 = vsel %vm298_vm1, %v485_v12, 0.0 }
 0x1dd   : > { %v490_v3 = vadd.f32 %v489_v2, %v488_v63 }
 0x1df   : > { %v492_v8 = vadd.f32 %v491_v7, %v490_v3 }
 0x1e1   : > { %v494_v11 = vadd.f32 %v493_v10, %v492_v8 }
 0x1e3   : > { %v496_v14 = vadd.f32 %v495_v13, %v494_v11 }
 0x1e5   : > { %v498_v16 = vadd.f32 %v497_v15, %v496_v14 }
 0x1e7   : > { %v500_v18 = vadd.f32 %v499_v17, %v498_v16 }
 0x1e9   : > { %v501_v19 = vrot.slane %v500_v18, 4 }
 0x1eb   : > { %v502_v20 = vadd.f32 %v501_v19, %v500_v18  ;;  %v739_v19 = vadd.s32 8, %v2545_v46 }
 0x1ed   : > { %v503_v21 = vrot.slane %v502_v20, 2 }
 0x1ef   : > { %v504_v22 = vadd.f32 %v503_v21, %v502_v20  ;;  %v740_v20 = vadd.s32 16, %v2545_v46  ;;  %v741_v21 = vadd.s32 24, %v2545_v46 }
 0x1f1   : > { %v505_v23 = vrot.slane %v504_v22, 1 }
 0x1f3   : > { %v506_v24 = vadd.f32 %v505_v23, %v504_v22  ;;  %v2644_v22 = vadd.s32 32, %v2545_v46  ;;  %v2647_v23 = vadd.s32 40, %v2545_v46 }
 0x1f5   : > { %2158 = vmatmul.mubr.msk.f32.vlgmr.msra.gmra.mrb[0].mxu0 %vm298_vm1, %v506_v24 }
 0x1f6   : > { %2220 = vmatpush3.bf16.msra.mxu0 %v2378_v27 }
 0x1f7   : > { %2221 = vmatprep.subr.bf16.mxu0 %v2380_v29 }
 0x1fa   : > { %2222 = vmatpush3.bf16.msra.mxu0 %v2380_v29  ;;  %v748_v29 = vand.u32 7, %v740_v20 }
 0x1fb   : > { %2231 = vmatprep.subr.bf16.mxu0 %v2599_v31 }
 0x1fc   : > { %vm2692_vm5 = vcmp.ge.s32.totalorder %v748_v29, 1  ;;  %vm2712_vm8 = vcmp.le.s32.totalorder %v748_v29, 6 }
 0x2c8   : > { %v576_v25 = vpop.f32.mrb[0].mxu0 }
 0x2c9   : > { %v2159_v26 = vpop.f32.mrb[1].mxu0  ;;  %2169 = vmatmul.mubr.msk.f32.vlgmr.msra.gmra.mrb[4].mxu1 %vm298_vm1, %v576_v25  ;;  %v747_v25 = vand.u32 7, %v739_v19 }
 0x2ca   : > { %2172 = vmatpush3.bf16.msra.mxu1 %v2379_v28  ;;  %v746_v28 = vand.u32 7, %v2545_v46 }
 0x2cb   : > { %2173 = vmatprep.subr.bf16.mxu1 %v2381_v30  ;;  %vm2668_vm4 = vcmp.ge.s32.totalorder %v747_v25, 1  ;;  %vm2708_vm7 = vcmp.le.s32.totalorder %v747_v25, 6 }
 0x2cc   : > { %vm2698_vm6 = vcmp.le.s32.totalorder %v746_v28, 6 }
 0x2ce   : > { %2174 = vmatpush3.bf16.msra.mxu1 %v2381_v30 }
 0x2cf   : > { %2183 = vmatprep.subr.bf16.mxu1 %v2605_v32 }
 0x39c   : > { %v649_v33 = vpop.f32.mrb[4].mxu1 }
 0x39d   : > { %v650_v34 = vadd.f32 1e-06, %v649_v33  ;;  %v2170_v35 = vpop.f32.mrb[5].mxu1 }
 0x39f   : > { %2396 = vrsqrt.f32 %v650_v34  ;;  %v749_v34 = vand.u32 7, %v741_v21 }
 0x3a1   : > { %vm2716_vm9 = vcmp.le.s32.totalorder %v749_v34, 6  ;;  %vm2731_vm10 = vcmp.ge.s32.totalorder %v749_v34, 1 }
 0x3a9   : > { %v2397_v37 = vpop.eup %2396 }
 0x3aa   : > { %v654_v38 = vmul.f32 %v2397_v37, %v288_v36 }
 0x3ac   : > { %v658_v39 = vrot.slane %v654_v38, %v468_v47  ;;  %v750_v38 = vand.u32 7, %v2644_v22 }
 0x3ae   : > { %v659_v41 = vmul.f32 %v658_v39, %v2550_v51  ;;  %v660_v42 = vmul.f32 %v658_v39, %v2552_v52  ;;  %v661_v43 = vmul.f32 %v658_v39, %v2554_v53  ;;  %v662_v44 = vmul.f32 %v658_v39, %v2556_v54 }
 0x3af   : > { %v663_v45 = vmul.f32 %v658_v39, %v2558_v55  ;;  %v664_v48 = vmul.f32 %v658_v39, %v2566_v59  ;;  %v665_v49 = vmul.f32 %v658_v39, %v476_v0  ;;  %v666_v50 = vmul.f32 %v658_v39, %v477_v4 }
 0x3b0   : > { %v673_v56 = vadd.f32 %v1953_v40, %v659_v41  ;;  %v674_v47 = vadd.f32 %v1953_v40, %v660_v42  ;;  %v2622_v57 = vadd.f32 %v1953_v40, %v661_v43  ;;  %v2624_v58 = vadd.f32 %v1953_v40, %v662_v44 }
 0x3b1   : > { %v2626_v60 = vadd.f32 %v1953_v40, %v663_v45  ;;  %v2628_v51 = vadd.f32 %v1953_v40, %v664_v48  ;;  %v2631_v61 = vadd.f32 %v1953_v40, %v665_v49  ;;  %v2634_v59 = vadd.f32 %v1953_v40, %v666_v50 }
 0x3b2   : > { %v1954_v52 = vmul.f32 -1.442695, %v673_v56  ;;  %v1955_v53 = vmul.f32 -1.442695, %v674_v47  ;;  %v1956_v54 = vmul.f32 -1.442695, %v2622_v57 }
 0x3b3   : > { %v1957_v55 = vmul.f32 -1.442695, %v2624_v58  ;;  %v1958_v62 = vmul.f32 -1.442695, %v2626_v60  ;;  %v1959_v63 = vmul.f32 -1.442695, %v2628_v51 }
 0x3b4   : > { %2398 = vpow2.f32 %v1954_v52  ;;  %v1960_v0 = vmul.f32 -1.442695, %v2631_v61  ;;  %v1961_v1 = vmul.f32 -1.442695, %v2634_v59  ;;  %v751_v39 = vand.u32 7, %v2647_v23  ;;  %v2383_v52 = vld [vmem:[%s3119_s5 + $0x58] sm:$0xff]  }
 0x3b5   : > { %2400 = vpow2.f32 %v1955_v53  ;;  %v3134_v53 = vmov 0  ;;  %vm2751_vm11 = vcmp.ge.s32.totalorder %v750_v38, 1  ;;  %vm2777_vm13 = vcmp.le.s32.totalorder %v750_v38, 6 }
 0x3b6   : > { %2402 = vpow2.f32 %v1956_v54  ;;  %v3135_v53 = vsel %vm2698_vm6, 4294967295, %v3134_v53  ;;  %vm2771_vm12 = vcmp.ge.s32.totalorder %v751_v39, 1  ;;  %vm2839_vm14 = vcmp.le.s32.totalorder %v751_v39, 6 }
 0x3b7   : > { %2404 = vpow2.f32 %v1957_v55  ;;  %v3150_v38 = vmov 0 }
 0x3b8   : > { %2406 = vpow2.f32 %v1958_v62  ;;  %v3151_v38 = vsel %vm2839_vm14, 4294967295, %v3150_v38 }
 0x3b9   : > { %2408 = vpow2.f32 %v1959_v63 }
 0x3ba   : > { %2410 = vpow2.f32 %v1960_v0  ;;  %v2385_v0 = vld [vmem:[%s3119_s5 + $0x8] sm:$0xff]  }
 0x3bb   : > { %2412 = vpow2.f32 %v1961_v1 }
 0x3be   : > { %v2399_v2 = vpop.eup %2398 }
 0x3bf   : > { %v2401_v3 = vpop.eup %2400  ;;  %v705_v4 = vadd.f32 1.0, %v2399_v2 }
 0x3c0   : > { %v2403_v5 = vpop.eup %2402  ;;  %v706_v7 = vadd.f32 1.0, %v2401_v3 }
 0x3c1   : > { %v2405_v8 = vpop.eup %2404  ;;  %2414 = vrcp.f32 %v705_v4  ;;  %v707_v9 = vadd.f32 1.0, %v2403_v5 }
 0x3c2   : > { %v2407_v10 = vpop.eup %2406  ;;  %2416 = vrcp.f32 %v706_v7  ;;  %v708_v11 = vadd.f32 1.0, %v2405_v8  ;;  %v3144_v7 = vmov 0 }
 0x3c3   : > { %v2409_v12 = vpop.eup %2408  ;;  %2418 = vrcp.f32 %v707_v9  ;;  %v709_v13 = vadd.f32 1.0, %v2407_v10  ;;  %v3145_v7 = vsel %vm2751_vm11, 4294967295, %v3144_v7  ;;  %v2767_v10 = vld [vmem:[%s3119_s5 + $0x60] sm:$0xff]  }
 0x3c4   : > { %v2411_v14 = vpop.eup %2410  ;;  %2420 = vrcp.f32 %v708_v11  ;;  %v710_v15 = vadd.f32 1.0, %v2409_v12  ;;  %v3146_v11 = vmov 0 }
 0x3c5   : > { %v2413_v16 = vpop.eup %2412  ;;  %2422 = vrcp.f32 %v709_v13  ;;  %v711_v17 = vadd.f32 1.0, %v2411_v14  ;;  %v3147_v11 = vsel %vm2771_vm12, 4294967295, %v3146_v11 }
 0x3c6   : > { %2424 = vrcp.f32 %v710_v15  ;;  %v712_v18 = vadd.f32 1.0, %v2413_v16  ;;  %v744_v15 = vadd.s32 48, %v2545_v46 }
 0x3c7   : > { %2426 = vrcp.f32 %v711_v17 }
 0x3c8   : > { %2428 = vrcp.f32 %v712_v18 }
 0x3cb   : > { %v2415_v24 = vpop.eup %2414 }
 0x3cc   : > { %v2417_v26 = vpop.eup %2416  ;;  %v2649_v27 = vmul.f32 %v2415_v24, %v673_v56  ;;  %v745_v24 = vadd.s32 56, %v2545_v46 }
 0x3cd   : > { %v2419_v30 = vpop.eup %2418  ;;  %v2652_v33 = vmul.f32 %v2417_v26, %v674_v47 }
 0x3ce   : > { %v2421_v35 = vpop.eup %2420  ;;  %v835_v36 = vpack.c.bf16 %v2649_v27, %v2440_v6  ;;  %v2659_v37 = vmul.f32 %v2419_v30, %v2622_v57  ;;  %v1022_v44 = vrot.slane %v2649_v27, 1  ;;  %v786_v3 = vrot.slane %v2649_v27, 7 }
 0x3cf   : > { %v2423_v40 = vpop.eup %2422  ;;  %v1275_v41 = vpack.c.bf16 %v2652_v33, %v2649_v27  ;;  %v2666_v42 = vmul.f32 %v2421_v35, %v2624_v58  ;;  %v1023_v50 = vrot.slane %v2652_v33, 1  ;;  %v753_v23 = vand.u32 7, %v745_v24  ;;  %v2389_v24 = vld [vmem:[%s3119_s5 + $0x28] sm:$0xff]  }
 0x3d0   : > { %v2425_v45 = vpop.eup %2424  ;;  %2175 = vmatprep.mubr.msk.bf16.mxu1 %vm298_vm1, %v835_v36  ;;  %v2676_v48 = vpack.c.bf16 %v2659_v37, %v2652_v33  ;;  %v2679_v49 = vmul.f32 %v2423_v40, %v2626_v60  ;;  %v1024_v56 = vrot.slane %v2659_v37, 1  ;;  %v788_v13 = vrot.slane %v2659_v37, 7 }
 0x3d1   : > { %v2427_v47 = vpop.eup %2426  ;;  %2223 = vmatprep.mubr.msk.bf16.mxu0 %vm298_vm1, %v1275_v41  ;;  %v1276_v57 = vpack.c.bf16 %v2666_v42, %v2659_v37  ;;  %v2687_v58 = vmul.f32 %v2425_v45, %v2628_v51  ;;  %v1025_v9 = vrot.slane %v2666_v42, 1  ;;  %v789_v19 = vrot.slane %v2666_v42, 7 }
 0x3d2   : > { %v2429_v54 = vpop.eup %2428  ;;  %2176 = vmatmul.mubr.msk.bf16.vlgmr.msra.gmra.mrb[8].mxu1 %vm298_vm1, %v2676_v48  ;;  %v2706_v51 = vpack.c.bf16 %v2679_v49, %v2666_v42  ;;  %v2739_v5 = vmul.f32 %v2427_v47, %v2631_v61  ;;  %v787_v61 = vrot.slane %v2652_v33, 7  ;;  %v1026_v12 = vrot.slane %v2679_v49, 1 }
 0x3d3   : > { %2224 = vmatmul.mubr.msk.bf16.vlgmr.msra.gmra.mrb[4].mxu0 %vm298_vm1, %v1276_v57  ;;  %v1277_v1 = vpack.c.bf16 %v2687_v58, %v2679_v49  ;;  %v2727_v2 = vmul.f32 %v2429_v54, %v2634_v59  ;;  %2184 = vmatpush3.bf16.msra.mxu1 %v2605_v32  ;;  %v2743_v59 = vsel %vm3122_vm3, %v1023_v50, %v1024_v56  ;;  %v790_v22 = vrot.slane %v2679_v49, 7 }
 0x3d4   : > { %2232 = vmatpush3.bf16.msra.mxu0 %v2599_v31  ;;  %2179 = vmatprep.mubr.msk.bf16.mxu1 %vm298_vm1, %v2706_v51  ;;  %v2749_v32 = vsel %vm3122_vm3, %v1022_v44, %v1023_v50  ;;  %v2758_v31 = vld [vmem:[%s3119_s5 + $0x20] sm:$0xff]   ;;  %v1382_v18 = vsel %vm2708_vm7, %v2743_v59, 0.0  ;;  %v2797_v20 = vpack.c.bf16 %v2739_v5, %v2687_v58  ;;  %v2809_v26 = vsel %vm3126_vm2, %v786_v3, %v787_v61 }
 0x3d5   : > { %2227 = vmatprep.mubr.msk.bf16.mxu0 %vm298_vm1, %v1277_v1  ;;  %2233 = vmatprep.subr.bf16.mxu0 %v2383_v52  ;;  %v793_v8 = vrot.slane %v2727_v2, 7  ;;  %v1381_v17 = vsel %vm2698_vm6, %v2749_v32, 0.0  ;;  %v1278_v25 = vpack.c.bf16 %v2727_v2, %v2739_v5  ;;  %v2814_v30 = vsel %vm3122_vm3, %v1024_v56, %v1025_v9 }
 0x3d6   : > { %2185 = vmatprep.subr.bf16.mxu1 %v2385_v0  ;;  %v1389_v33 = vpack.c.bf16 %v1382_v18, %v1381_v17  ;;  %v2821_v34 = vsel %vm3126_vm2, %v787_v61, %v788_v13  ;;  %v2825_v35 = vsel %vm3122_vm3, %v1025_v9, %v1026_v12  ;;  %v2829_v36 = vsel %vm3126_vm2, %v788_v13, %v789_v19 }
 0x3d7   : > { %v2786_v16 = vsel %vm3126_vm2, %v793_v8, %v786_v3  ;;  %2186 = vmatpush3.bf16.msra.mxu1 %v2385_v0  ;;  %v2835_v37 = vsel %vm3126_vm2, %v789_v19, %v790_v22  ;;  %v1027_v40 = vrot.slane %v2687_v58, 1  ;;  %v752_v41 = vand.u32 7, %v744_v15  ;;  %v2387_v15 = vld [vmem:[%s3119_s5 + $0x68] sm:$0xff]  }
 0x3d8   : > { %2234 = vmatpush3.bf16.msra.mxu0 %v2383_v52  ;;  %v812_v21 = vsel %vm2668_vm4, %v2786_v16, 0.0  ;;  %2195 = vmatprep.subr.bf16.mxu1 %v2758_v31  ;;  %v1383_v42 = vsel %vm2712_vm8, %v2814_v30, 0.0  ;;  %v813_v45 = vsel %vm2692_vm5, %v2809_v26, 0.0  ;;  %v1028_v49 = vrot.slane %v2739_v5, 1 }
 0x3d9   : > { %v819_v29 = vpack.c.bf16 %v812_v21, %v2440_v6  ;;  %2243 = vmatprep.subr.bf16.mxu0 %v2767_v10  ;;  %v814_v39 = vsel %vm2731_vm10, %v2821_v34, 0.0  ;;  %v1384_v50 = vsel %vm2716_vm9, %v2825_v35, 0.0  ;;  %v815_v56 = vsel %vm2751_vm11, %v2829_v36, 0.0 }
 0x3da   : > { %2180 = vmatmul.mubr.msk.bf16.gmra.mrb[12].mxu1 %vm298_vm1, %v2797_v20  ;;  %v2863_v47 = vsel %vm3122_vm3, %v1026_v12, %v1027_v40  ;;  %v816_v57 = vsel %vm2771_vm12, %v2835_v37, 0.0  ;;  %v2870_v52 = vsel %vm3122_vm3, %v1027_v40, %v1028_v49  ;;  %v791_v54 = vrot.slane %v2687_v58, 7 }
 0x3db   : > { %2228 = vmatmul.mubr.msk.bf16.gmra.mrb[8].mxu0 %vm298_vm1, %v1278_v25  ;;  %2187 = vmatprep.mubr.msk.bf16.mxu1 %vm298_vm1, %v819_v29  ;;  %v792_v0 = vrot.slane %v2739_v5, 7  ;;  %v1385_v1 = vsel %vm2777_vm13, %v2863_v47, 0.0  ;;  %v1386_v3 = vsel %vm2839_vm14, %v2870_v52, 0.0  ;;  %v1029_v61 = vrot.slane %v2727_v2, 1  ;;  %v2394_v5 = vld [vmem:[%s3119_s5 + $0x80] sm:$0xff]  }
 0x3dc   : > { %2235 = vmatprep.mubr.msk.bf16.mxu0 %vm298_vm1, %v1389_v33  ;;  %v820_v9 = vpack.c.bf16 %v814_v39, %v813_v45  ;;  %v1390_v12 = vpack.c.bf16 %v1384_v50, %v1383_v42  ;;  %v821_v13 = vpack.c.bf16 %v816_v57, %v815_v56  ;;  %vm2884_vm15 = vcmp.ge.s32.totalorder %v752_v41, 1 }
 0x3dd   : > { %v1391_v17 = vpack.c.bf16 %v1386_v3, %v1385_v1  ;;  %vm2889_vm0 = vcmp.ge.s32.totalorder %v753_v23, 1  ;;  %v2897_v19 = vsel %vm3126_vm2, %v791_v54, %v792_v0  ;;  %v2901_v21 = vsel %vm3126_vm2, %v790_v22, %v791_v54 }
 0x3de   : > { %vm2908_vm3 = vcmp.le.s32.totalorder %v752_v41, 6  ;;  %vm2912_vm6 = vcmp.le.s32.totalorder %v753_v23, 6  ;;  %vm3160_vm12 = vcmp.lt.s32.totalorder %v2545_v46, 7  ;;  %vm2930_vm11 = vcmp.ge.s32.totalorder %v746_v28, 1 }
 0x3df   : > { %v2918_v22 = vsel %vm3160_vm12, %v1028_v49, %v1029_v61  ;;  %vm3161_vm2 = vmmov %vm3160_vm12  ;;  %v817_v41 = vsel %vm2884_vm15, %v2901_v21, 0.0  ;;  %v818_v27 = vsel %vm2889_vm0, %v2897_v19, 0.0  ;;  %v1048_v42 = vsel %vm2708_vm7, %v2749_v32, 0.0 }
 0x3e0   : > { %v2924_v33 = vsel %vm3161_vm2, %v1029_v61, %v1022_v44  ;;  %v2390_v44 = vld [vmem:[%s3119_s5 + $0x70] sm:$0xff]   ;;  %v1387_v28 = vsel %vm2908_vm3, %v2918_v22, 0.0  ;;  %v1503_v45 = vsel %vm2930_vm11, %v2809_v26, 0.0  ;;  %v1504_v49 = vsel %vm2668_vm4, %v2821_v34, 0.0 }
 0x3e1   : > { %v822_v23 = vpack.c.bf16 %v818_v27, %v817_v41  ;;  %v1055_v50 = vpack.c.bf16 %v1048_v42, %v2440_v6  ;;  %v1511_v32 = vpack.c.bf16 %v1504_v49, %v1503_v45  ;;  %v1049_v56 = vsel %vm2712_vm8, %v2743_v59, 0.0  ;;  %v2393_v27 = vld [vmem:[%s3119_s5 + $0x38] sm:$0xff]  }
 0x3e2   : > { %2188 = vmatmul.mubr.msk.bf16.vlgmr.msra.gmra.mrb[8].mxu1 %vm298_vm1, %v820_v9  ;;  %v1050_v57 = vsel %vm2716_vm9, %v2814_v30, 0.0  ;;  %v1505_v54 = vsel %vm2692_vm5, %v2829_v36, 0.0  ;;  %v1506_v1 = vsel %vm2731_vm10, %v2835_v37, 0.0  ;;  %v1051_v3 = vsel %vm2777_vm13, %v2825_v35, 0.0 }
 0x3e3   : > { %2236 = vmatmul.mubr.msk.bf16.vlgmr.msra.gmra.mrb[4].mxu0 %vm298_vm1, %v1390_v12  ;;  %2191 = vmatprep.mubr.msk.bf16.mxu1 %vm298_vm1, %v821_v13  ;;  %v1052_v61 = vsel %vm2839_vm14, %v2863_v47, 0.0  ;;  %vm3164_vm2 = vnez %v3145_v7  ;;  %vm3165_vm12 = vnez %v3147_v11  ;;  %v1056_v13 = vpack.c.bf16 %v1050_v57, %v1049_v56 }
 0x3e4   : > { %2244 = vmatpush3.bf16.msra.mxu0 %v2767_v10  ;;  %2239 = vmatprep.mubr.msk.bf16.mxu0 %vm298_vm1, %v1391_v17  ;;  %v1388_v10 = vsel %vm2912_vm6, %v2924_v33, 0.0  ;;  %v1507_v9 = vsel %vm3164_vm2, %v2901_v21, 0.0  ;;  %v1508_v12 = vsel %vm3165_vm12, %v2897_v19, 0.0  ;;  %v1057_v17 = vpack.c.bf16 %v1052_v61, %v1051_v3 }
 0x3e5   : > { %2245 = vmatprep.subr.bf16.mxu0 %v2387_v15  ;;  %2196 = vmatpush3.bf16.msra.mxu1 %v2758_v31  ;;  %v2392_v31 = vld [vmem:[%s3119_s5 + $0x30] sm:$0xff]   ;;  %v1392_v39 = vpack.c.bf16 %v1388_v10, %v1387_v28  ;;  %v1513_v41 = vpack.c.bf16 %v1508_v12, %v1507_v9  ;;  %vm3166_vm14 = vcmp.lt.s32.totalorder %v2545_v46, 1  ;;  %v1053_v10 = vsel %vm2908_vm3, %v2870_v52, 0.0 }
 0x3e6   : > { %2197 = vmatprep.subr.bf16.mxu1 %v2389_v24  ;;  %v795_v28 = vsel %vm3166_vm14, %v792_v0, %v793_v8  ;;  %v1054_v42 = vsel %vm2912_vm6, %v2918_v22, 0.0  ;;  %v1161_v8 = vsel %vm2930_vm11, %v2786_v16, 0.0  ;;  %v1162_v0 = vsel %vm2668_vm4, %v2809_v26, 0.0 }
 0x3e7   : > { %v1509_v46 = vsel %vm2884_vm15, %v795_v28, 0.0  ;;  %v1163_v43 = vsel %vm2692_vm5, %v2821_v34, 0.0  ;;  %v1164_v16 = vsel %vm2731_vm10, %v2829_v36, 0.0  ;;  %v1165_v26 = vsel %vm3164_vm2, %v2835_v37, 0.0 }
 0x3e8   : > { %2246 = vmatpush3.bf16.msra.mxu0 %v2387_v15  ;;  %v1512_v15 = vpack.c.bf16 %v1506_v1, %v1505_v54  ;;  %v1514_v29 = vpack.c.bf16 %v2440_v6, %v1509_v46  ;;  %v1166_v40 = vsel %vm3165_vm12, %v2901_v21, 0.0  ;;  %v1170_v45 = vpack.c.bf16 %v1164_v16, %v1163_v43  ;;  %v2048_v21 = vld [vmem:[%s3120_s6] ss:$0 sm:$0xff] }
 0x3e9   : > { %2198 = vmatpush3.bf16.msra.mxu1 %v2389_v24  ;;  %2255 = vmatprep.subr.bf16.mxu0 %v2390_v44  ;;  %v2391_v24 = vld [vmem:[%s3119_s5 + $0x78] sm:$0xff]   ;;  %v1171_v49 = vpack.c.bf16 %v1166_v40, %v1165_v26  ;;  %v1167_v60 = vsel %vm2884_vm15, %v2897_v19, 0.0  ;;  %v1168_v4 = vsel %vm2889_vm0, %v795_v28, 0.0  ;;  %vm3167_vm4 = vnez %v3135_v53 }
 0x3ea   : > { %2192 = vmatmul.mubr.msk.bf16.gmra.mrb[12].mxu1 %vm298_vm1, %v822_v23  ;;  %2207 = vmatprep.subr.bf16.mxu1 %v2392_v31  ;;  %v1739_v7 = vsel %vm3167_vm4, %v2743_v59, 0.0  ;;  %v1172_v11 = vpack.c.bf16 %v1168_v4, %v1167_v60  ;;  %v1741_v53 = vsel %vm2712_vm8, %v2825_v35, 0.0  ;;  %v1742_v55 = vsel %vm2716_vm9, %v2863_v47, 0.0 }
 0x3eb   : > { %2240 = vmatmul.mubr.msk.bf16.gmra.mrb[8].mxu0 %vm298_vm1, %v1392_v39  ;;  %2199 = vmatprep.mubr.msk.bf16.mxu1 %vm298_vm1, %v1055_v50  ;;  %v1743_v59 = vsel %vm2777_vm13, %v2870_v52, 0.0  ;;  %vm3168_vm5 = vnez %v3151_v38  ;;  %v1745_v62 = vsel %vm2908_vm3, %v2924_v33, 0.0 }
 0x3ec   : > { %2247 = vmatprep.mubr.msk.bf16.mxu0 %vm298_vm1, %v1511_v32  ;;  %v1750_v63 = vpack.c.bf16 %v2440_v6, %v1745_v62 }
 0x3f2   : > { %2200 = vmatmul.mubr.msk.bf16.vlgmr.msra.gmra.mrb[8].mxu1 %vm298_vm1, %v1056_v13 }
 0x3f3   : > { %2248 = vmatmul.mubr.msk.bf16.vlgmr.msra.gmra.mrb[4].mxu0 %vm298_vm1, %v1512_v15  ;;  %2203 = vmatprep.mubr.msk.bf16.mxu1 %vm298_vm1, %v1057_v17 }
 0x3f4   : > { %2256 = vmatpush3.bf16.msra.mxu0 %v2390_v44  ;;  %2251 = vmatprep.mubr.msk.bf16.mxu0 %vm298_vm1, %v1513_v41  ;;  %v1058_v44 = vpack.c.bf16 %v1054_v42, %v1053_v10 }
 0x3f5   : > { %2257 = vmatprep.subr.bf16.mxu0 %v2391_v24  ;;  %2208 = vmatpush3.bf16.msra.mxu1 %v2392_v31  ;;  %v1169_v31 = vpack.c.bf16 %v1162_v0, %v1161_v8 }
 0x3f6   : > { %2209 = vmatprep.subr.bf16.mxu1 %v2393_v27 }
 0x3f8   : > { %2258 = vmatpush3.bf16.msra.mxu0 %v2391_v24 }
 0x3f9   : > { %2210 = vmatpush3.bf16.msra.mxu1 %v2393_v27  ;;  %2267 = vmatprep.subr.bf16.mxu0 %v2394_v5 }
 0x3fa   : > { %2204 = vmatmul.mubr.msk.bf16.gmra.mrb[12].mxu1 %vm298_vm1, %v1058_v44 }
 0x3fb   : > { %2252 = vmatmul.mubr.msk.bf16.gmra.mrb[8].mxu0 %vm298_vm1, %v1514_v29  ;;  %2211 = vmatprep.mubr.msk.bf16.mxu1 %vm298_vm1, %v1169_v31 }
 0x3fc   : > { %2259 = vmatprep.mubr.msk.bf16.mxu0 %vm298_vm1, %v2676_v48  ;;  %v2395_v48 = vld [vmem:[%s3119_s5 + $0x88] sm:$0xff]  }
 0x402   : > { %2212 = vmatmul.mubr.msk.bf16.vlgmr.msra.gmra.mrb[8].mxu1 %vm298_vm1, %v1170_v45 }
 0x403   : > { %2260 = vmatmul.mubr.msk.bf16.vlgmr.msra.gmra.mrb[4].mxu0 %vm298_vm1, %v2706_v51  ;;  %2215 = vmatprep.mubr.msk.bf16.mxu1 %vm298_vm1, %v1171_v49  ;;  %v1740_v51 = vsel %vm2708_vm7, %v2814_v30, 0.0  ;;  %v1748_v30 = vpack.c.bf16 %v1742_v55, %v1741_v53 }
 0x404   : > { %2268 = vmatpush3.bf16.msra.mxu0 %v2394_v5  ;;  %2263 = vmatprep.mubr.msk.bf16.mxu0 %vm298_vm1, %v2797_v20  ;;  %v1628_v20 = vpack.c.bf16 %v2440_v6, %v2727_v2  ;;  %v1747_v34 = vpack.c.bf16 %v1740_v51, %v1739_v7  ;;  %v1744_v2 = vsel %vm3168_vm5, %v2918_v22, 0.0 }
 0x405   : > { %2269 = vmatprep.subr.bf16.mxu0 %v2395_v48  ;;  %v1749_v36 = vpack.c.bf16 %v1744_v2, %v1743_v59 }
 0x408   : > { %2270 = vmatpush3.bf16.msra.mxu0 %v2395_v48 }
 0x40a   : > { %2216 = vmatmul.mubr.msk.bf16.gmra.mrb[12].mxu1 %vm298_vm1, %v1172_v11 }
 0x40b   : > { %2264 = vmatmul.mubr.msk.bf16.gmra.mrb[8].mxu0 %vm298_vm1, %v1628_v20 }
 0x40c   : > { %2271 = vmatprep.mubr.msk.bf16.mxu0 %vm298_vm1, %v1747_v34 }
 0x413   : > { %2272 = vmatmul.mubr.msk.bf16.vlgmr.msra.gmra.mrb[4].mxu0 %vm298_vm1, %v1748_v30 }
 0x414   : > { %2275 = vmatprep.mubr.msk.bf16.mxu0 %vm298_vm1, %v1749_v36 }
 0x41b   : > { %2276 = vmatmul.mubr.msk.bf16.gmra.mrb[8].mxu0 %vm298_vm1, %v1750_v63  ;;  %vm1876_vm1 = vcmask 519168  }
 0x4d5   : > { %v2213_v14 = vpop.f32.mrb[8].mxu1 }
 0x4d6   : > { %v1236_v35 = vpop.f32.mrb[9].mxu1 }
 0x4d7   : > { %v2214_v37 = vpop.f32.mrb[10].mxu1 }
 0x4d8   : > { %v1239_v38 = vpop.f32.mrb[11].mxu1 }
 0x4dd   : > { %v2217_v47 = vpop.f32.mrb[12].mxu1 }
 0x4de   : > { %v1252_v52 = vpop.f32.mrb[13].mxu1 }
 0x4df   : > { %v2218_v58 = vpop.f32.mrb[14].mxu1 }
 0x4e0   : > { %v1255_v18 = vpop.f32.mrb[15].mxu1 }
 0x4e6   : > { %v2273_v19 = vpop.f32.mrb[4].mxu0 }
 0x4e7   : > { %v2303_v25 = vadd.f32 %v2273_v19, %v2213_v14  ;;  %v1814_v22 = vpop.f32.mrb[5].mxu0 }
 0x4e8   : > { %v2304_v33 = vadd.f32 %v1814_v22, %v1236_v35  ;;  %v2274_v6 = vpop.f32.mrb[6].mxu0 }
 0x4e9   : > { %v1862_v23 = vadd.f32 %v2303_v25, %v2048_v21  ;;  %v2305_v39 = vadd.f32 %v2274_v6, %v2214_v37  ;;  %v1817_v50 = vpop.f32.mrb[7].mxu0 }
 0x4ea   : > { %v1860_v32 = vadd.f32 %v2304_v33, %v2048_v21  ;;  %v2306_v56 = vadd.f32 %v1817_v50, %v1239_v38 }
 0x4eb   : > { %v1870_v57 = vpack.c.bf16 %v1862_v23, %v1862_v23  ;;  %v1863_v54 = vadd.f32 %v2305_v39, %v2048_v21 }
 0x4ec   : > { %v1868_v1 = vpack.c.bf16 %v1860_v32, %v1860_v32  ;;  %v1861_v3 = vadd.f32 %v2306_v56, %v2048_v21 }
 0x4ed   : > { %1879 = vst.msk [vmem:[%s3093_s28 + $0x8] sm:$0xf] %vm1876_vm1, %v1870_v57  ;;  %v1871_v61 = vpack.c.bf16 %v1863_v54, %v1863_v54 }
 0x4ee   : > { %1877 = vst.msk [vmem:[%s3093_s28] sm:$0xf] %vm1876_vm1, %v1868_v1  ;;  %v1869_v9 = vpack.c.bf16 %v1861_v3, %v1861_v3  ;;  %v2277_v12 = vpop.f32.mrb[8].mxu0 }
 0x4ef   : > { %1880 = vst.msk [vmem:[%s3093_s28 + $0xc] sm:$0xf] %vm1876_vm1, %v1871_v61  ;;  %v2307_v13 = vadd.f32 %v2277_v12, %v2217_v47  ;;  %v1830_v15 = vpop.f32.mrb[9].mxu0 }
 0x4f0   : > { %1878 = vst.msk [vmem:[%s3093_s28 + $0x4] sm:$0xf] %vm1876_vm1, %v1869_v9  ;;  %v2308_v17 = vadd.f32 %v1830_v15, %v1252_v52  ;;  %v2278_v24 = vpop.f32.mrb[10].mxu0 }
 0x4f1   : > { %v1866_v41 = vadd.f32 %v2307_v13, %v2048_v21  ;;  %v2309_v27 = vadd.f32 %v2278_v24, %v2218_v58  ;;  %v1833_v28 = vpop.f32.mrb[11].mxu0 }
 0x4f2   : > { %v1864_v10 = vadd.f32 %v2308_v17, %v2048_v21  ;;  %v2310_v42 = vadd.f32 %v1833_v28, %v1255_v18 }
 0x4f3   : > { %v1874_v5 = vpack.c.bf16 %v1866_v41, %v1866_v41  ;;  %v1867_v46 = vadd.f32 %v2309_v27, %v2048_v21 }
 0x4f4   : > { %v1872_v8 = vpack.c.bf16 %v1864_v10, %v1864_v10  ;;  %v1865_v0 = vadd.f32 %v2310_v42, %v2048_v21 }
 0x4f5   : > { %1883 = vst.msk [vmem:[%s3093_s28 + $0x18] sm:$0xf] %vm1876_vm1, %v1874_v5  ;;  %v1875_v44 = vpack.c.bf16 %v1867_v46, %v1867_v46 }
 0x4f6   : > { %1881 = vst.msk [vmem:[%s3093_s28 + $0x10] sm:$0xf] %vm1876_vm1, %v1872_v8  ;;  %v1873_v29 = vpack.c.bf16 %v1865_v0, %v1865_v0 }
 0x4f7   : > { %1884 = vst.msk [vmem:[%s3093_s28 + $0x1c] sm:$0xf] %vm1876_vm1, %v1875_v44 }
 0x4f8   : > { %1882 = vst.msk [vmem:[%s3093_s28 + $0x14] sm:$0xf] %vm1876_vm1, %v1873_v29 }
 0x4f9 PF: > { %s17_s24 = sadd.s32 1, %s2436_s24  }
 0x4fa   : > { %p14_p4 = scmp.ge.s32.totalorder %s17_s24, 4  }
 0x4fc   :  { %16 = sbr.rel (!%p14_p4) target bundleno = 1 (0x1), region = 86 }

// kernel: resnet_block_nchw.3
= control target key start
LH: loop header
LB: loop body
LE: loop exit
PB: predicated region body
PF: predicated region fallthrough
CT: control target
= control target key end

     0   :  { %15 = vsyncpa [#allocation3], 0  ;;  %s4096_s0 = inlined_call_operand.vmem [shape: bf16[2,8,8,64], index: 0, kind: input, shape index: {}]   ;;  %s4097_s1 = inlined_call_operand.vmem [shape: f32[1,64], index: 1, kind: input, shape index: {}]   ;;  %s4098_s2 = inlined_call_operand.vmem [shape: f32[1,64], index: 2, kind: input, shape index: {}]   ;;  %s4099_s3 = inlined_call_operand.vmem [shape: f32[64,32], index: 3, kind: input, shape index: {}]   ;;  %s4100_s4 = inlined_call_operand.vmem [shape: f32[32,64], index: 4, kind: input, shape index: {}]   ;;  %s4101_s5 = inlined_call_operand.vmem [shape: bf16[9,64,64], index: 5, kind: input, shape index: {}]   ;;  %s4102_s6 = inlined_call_operand.vmem [shape: f32[1,64], index: 6, kind: input, shape index: {}]   ;;  %s4103_s7 = inlined_call_operand.vmem [shape: bf16[2,8,8,32], index: 7, kind: input, shape index: {}]   ;;  %s4104_s8 = inlined_call_operand.vmem [shape: bf16[32,64], index: 8, kind: input, shape index: {}]   ;;  %s4105_s9 = inlined_call_operand.vmem [shape: f32[1,64], index: 9, kind: input, shape index: {}]   ;;  %s4106_s10 = inlined_call_operand.hbm [shape: f32[2,8,8,64], index: 10, kind: output, shape index: {}]  }
   0x1   :  { %17 = vsyncpa [#allocation3 + $0x1], 0  ;;  %s3244_s13 = smov 0   ;;  %s3246_s14 = smov 0  }
   0x2   :  { %s3248_s15 = smov 0   ;;  %s3250_s16 = smov 0  }
   0x3 LB: > { %s3265_s17 = sadd.s32 4294967295, %s3181_s16   ;;  %s2356_s18 = sadd.s32 4294967294, %s3181_s16   ;;  %s3181_s16 = sphi %s3250_s16, %s4161_s16   ;;  %s3177_s15 = sphi %s3248_s15, %s4160_s15   ;;  %s3173_s14 = sphi %s3246_s14, %s4159_s14   ;;  %s3169_s13 = sphi %s3244_s13, %s4158_s13  }
   0x4   : > { %s3269_s19 = sadd.s32 1, %s3181_s16   ;;  %s250_s20 = sadd.s32 1, %s3177_s15 }
   0x5   : > { %s247_s21 = ssub.s32 %s3181_s16, %s3269_s19  ;;  %p260_p0 = scmp.ne.s32.totalorder %s3177_s15, %s3173_s14 }
   0x6   : > { %p248_p1 = scmp.eq.s32.totalorder %s247_s21, 0  ;;  %p261_p2 = scmp.eq.s32.totalorder %s3265_s17, 1 }
   0x7   : > { %p266_p3 = scmp.ne.s32.totalorder %s3173_s14, %s3169_s13  ;;  %p267_p4 = scmp.eq.s32.totalorder %s2356_s18, 1 }
   0x8   : > { %s3280_s22 = scalar_select %p248_p1, %s3177_s15, %s250_s20  }
   0x9   : > { %p3282_p5 = por %p261_p2, %p260_p0  ;;  %p3286_p6 = por %p267_p4, %p266_p3 }
   0xa   : > { %p2359_p7 = scmp.ge.s32.totalorder %s3181_s16, 1  ;;  %p325_p8 = scmp.lt.s32.totalorder %s3181_s16, 3 }
   0xc   : > { %p326_p9 = pnand %p2359_p7, %p325_p8 }
   0xd   : > { %v397_v0 = vld [vmem:[%s4099_s3] sm:$0xff] (!%p326_p9)  ;;  %v398_v1 = vld [vmem:[%s4099_s3 + $0x8] sm:$0xff] (!%p326_p9)  ;;  %v399_v2 = vld [vmem:[%s4099_s3 + $0x10] sm:$0xff] (!%p326_p9)  ;;  %v3183_v3 = vmov (!%p326_p9), 0.0|0.0   ;;  %vm3184_vm0 = vmmov (!%p326_p9), 0   ;;  %v3185_v6 = vmov (!%p326_p9), 0.0   ;;  %v578_v55 = vlaneseq (!%p326_p9) }
   0xe   : > { %329 = sbr.rel (%p326_p9) target bundleno = 1310 (0x51e), region = 60  ;;  %2875 = vmatprep.subr.bf16.mxu1 (!%p326_p9), %v3183_v3  ;;  %v3302_v4 = vpack.c.bf16 (!%p326_p9), %v398_v1, %v397_v0  ;;  %v400_v5 = vld [vmem:[%s4099_s3 + $0x18] sm:$0xff] (!%p326_p9)  ;;  %2675 = vmatprep.mubr.msk.f32.mxu1 (!%p326_p9), %vm3184_vm0, %v3185_v6  ;;  %p368_p10 = scmp.lt.s32.totalorder (!%p326_p9), %s3265_s17, 1  ;;  %v401_v7 = vld [vmem:[%s4099_s3 + $0x20] sm:$0xff] (!%p326_p9)  ;;  %v402_v8 = vld [vmem:[%s4099_s3 + $0x28] sm:$0xff] (!%p326_p9)  ;;  %vm409_vm1 = vcmask (!%p326_p9), 523264  }
   0xf   : > { %v405_v9 = vld [vmem:[%s4100_s4] sm:$0xff] (!%p326_p9)  ;;  %2905 = vmatprep.subr.bf16.mxu0 (!%p326_p9), %v3183_v3  ;;  %2716 = vmatprep.mubr.msk.f32.mxu0 (!%p326_p9), %vm3184_vm0, %v3185_v6  ;;  %v3323_v10 = vpack.c.bf16 (!%p326_p9), %v400_v5, %v399_v2  ;;  %v406_v11 = vld [vmem:[%s4100_s4 + $0x8] sm:$0xff] (!%p326_p9)  ;;  %v407_v12 = vld [vmem:[%s4100_s4 + $0x10] sm:$0xff] (!%p326_p9)  ;;  %v2882_v17 = vpack.c.bf16 (!%p326_p9), %v402_v8, %v401_v7  ;;  %vm4107_vm2 = vcmask (!%p326_p9), 261120   ;;  %v3405_v56 = vshrl.u32 (!%p326_p9), %v578_v55, 7  ;;  %s365_s26 = sand.u32 (!%p326_p9), 1, %s3173_s14  }
  0x10   : > { %2877 = vmatpush3.bf16.msra.mxu1 (!%p326_p9), %v3302_v4  ;;  %v408_v13 = vld [vmem:[%s4100_s4 + $0x18] sm:$0xff] (!%p326_p9)  ;;  %v2888_v14 = vpack.c.bf16 (!%p326_p9), %v406_v11, %v405_v9  ;;  %v403_v15 = vld [vmem:[%s4099_s3 + $0x30] sm:$0xff] (!%p326_p9)  ;;  %s2533_s11 = sshll.u32 (!%p326_p9), %s3265_s17, 10  ;;  %s3186_s27 = smov (!%p326_p9), [#allocation2]  }
  0x11   : > { %2878 = vmatprep.subr.bf16.mxu1 (!%p326_p9), %v3183_v3  ;;  %v404_v16 = vld [vmem:[%s4099_s3 + $0x38] sm:$0xff] (!%p326_p9)  ;;  %v2891_v21 = vpack.c.bf16 (!%p326_p9), %v408_v13, %v407_v12  ;;  %v580_v57 = vsub.s32 (!%p326_p9), 0, %v3405_v56  ;;  %vm4112_vm3 = vcmp.lt.s32.totalorder (!%p326_p9), %v3405_v56, 1  ;;  %vm4108_vm4 = vcmp.lt.s32.totalorder (!%p326_p9), %v3405_v56, 7 }
  0x12   : > { %2907 = vmatpush3.bf16.msra.mxu0 (!%p326_p9), %v2888_v14  ;;  %v2885_v31 = vpack.c.bf16 (!%p326_p9), %v404_v16, %v403_v15 }
  0x13   : > { %2908 = vmatprep.subr.bf16.mxu0 (!%p326_p9), %v3183_v3 }
  0x14   : > { %2880 = vmatpush3.bf16.msra.mxu1 (!%p326_p9), %v3323_v10 }
  0x15   : > { %s3326_s28 = scalar_select %p368_p10, %s3265_s17, 1  ;;  %2881 = vmatprep.subr.bf16.mxu1 %v3183_v3 }
  0x16   : > { %2910 = vmatpush3.bf16.msra.mxu0 %v2891_v21  ;;  %s4055_s17 = scalar_lea.sflag [#allocation3], %s365_s26 }
  0x17   : > { %s2531_s29 = sshll.u32 %s3326_s28, 5  ;;  %s4046_s28 = scalar_lea.hbm %s4106_s10, %s2533_s11 }
  0x18   : > { %s372_s12 = scalar_lea.vmem %s4096_s0, %s2531_s29  ;;  %2883 = vmatpush3.bf16.msra.mxu1 %v2882_v17  ;;  %s3390_s21 = scalar_lea.vmem %s4103_s7, %s2531_s29 }
  0x19   : > { %v3351_v18 = vld [vmem:[%s372_s12] sm:$0xff]   ;;  %v3353_v19 = vld [vmem:[%s372_s12 + $0x8] sm:$0xff]   ;;  %v3355_v20 = vld [vmem:[%s372_s12 + $0x10] sm:$0xff]   ;;  %2884 = vmatprep.subr.bf16.mxu1 %v3183_v3  ;;  %s2360_s29 = sshll.u32 %s365_s26, 6 }
  0x1a   : > { %v2536_v22 = vunpack.c.l.bf16 %v3351_v18  ;;  %v2537_v23 = vunpack.c.h.bf16 %v3351_v18  ;;  %v2540_v24 = vunpack.c.l.bf16 %v3353_v19  ;;  %v2541_v25 = vunpack.c.h.bf16 %v3353_v19  ;;  %v3363_v26 = vld [vmem:[%s372_s12 + $0x18] sm:$0xff]   ;;  %s367_s30 = scalar_lea.vmem [#allocation2], %s2360_s29 }
  0x1b   : > { %v2544_v27 = vunpack.c.l.bf16 %v3355_v20  ;;  %v2545_v28 = vunpack.c.h.bf16 %v3355_v20  ;;  %v2548_v29 = vunpack.c.l.bf16 %v3363_v26  ;;  %v2549_v30 = vunpack.c.h.bf16 %v3363_v26  ;;  %s2282_s12 = sshll.u32 %s367_s30, 4  ;;  %s4048_s12 = int_to_ptr.vmem [resolvable:$true] %s2282_s12 }
  0x1c   : > { %v410_v32 = vsel %vm409_vm1, %v2536_v22, 0.0  ;;  %v411_v33 = vsel %vm409_vm1, %v2537_v23, 0.0  ;;  %v413_v34 = vsel %vm409_vm1, %v2540_v24, 0.0  ;;  %v415_v36 = vsel %vm409_vm1, %v2541_v25, 0.0  ;;  %2886 = vmatpush3.bf16.msra.mxu1 %v2885_v31  ;;  %s3119_s25 = scalar_lea.vmem %s4048_s12, 1024 }
  0x1d   : > { %v412_v35 = vadd.f32 %v411_v33, %v410_v32  ;;  %v417_v37 = vsel %vm409_vm1, %v2544_v27, 0.0  ;;  %v419_v38 = vsel %vm409_vm1, %v2545_v28, 0.0  ;;  %v421_v39 = vsel %vm409_vm1, %v2548_v29, 0.0  ;;  %2887 = vmatprep.subr.bf16.mxu1 %v3183_v3  ;;  %p3120_p11 = scmp.ne.s32.totalorder %s4048_s12, %s3119_s25 }
  0x1e   : > { %v423_v40 = vsel %vm409_vm1, %v2549_v30, 0.0 }
  0x1f   : > { %v414_v41 = vadd.f32 %v413_v34, %v412_v35  ;;  %p3121_p12 = pnand %p3120_p11, %p3282_p5 }
  0x21   : > { %v416_v42 = vadd.f32 %v415_v36, %v414_v41  ;;  %v3047_v41 = vld [vmem:[%s4101_s5 + $0x90] sm:$0xff]   ;;  %p3122_p13 = pneg %p3121_p12 }
  0x23   : > { %v418_v43 = vadd.f32 %v417_v37, %v416_v42  ;;  %v3043_v37 = vld [vmem:[%s4101_s5 + $0x80] sm:$0xff]   ;;  %v3048_v42 = vld [vmem:[%s4101_s5 + $0x30] sm:$0xff]  }
  0x24   : > { %2783 = vmatprep.subr.bf16.mxu0 %v3043_v37 }
  0x25   : > { %v420_v44 = vadd.f32 %v419_v38, %v418_v43  ;;  %v3044_v38 = vld [vmem:[%s4101_s5 + $0x20] sm:$0xff]   ;;  %v3049_v43 = vld [vmem:[%s4101_s5 + $0x98] sm:$0xff]  }
  0x27   : > { %v422_v45 = vadd.f32 %v421_v39, %v420_v44  ;;  %v3045_v39 = vld [vmem:[%s4101_s5 + $0x88] sm:$0xff]   ;;  %v3050_v44 = vld [vmem:[%s4101_s5 + $0x38] sm:$0xff]  }
  0x29   : > { %v424_v46 = vadd.f32 %v423_v40, %v422_v45  ;;  %v3046_v40 = vld [vmem:[%s4101_s5 + $0x28] sm:$0xff]   ;;  %v3485_v45 = vld [vmem:[%s4101_s5 + $0xa0] sm:$0xff]  }
  0x2b   : > { %v425_v47 = vrot.slane %v424_v46, 4 }
  0x2d   : > { %v426_v48 = vadd.f32 %v425_v47, %v424_v46  ;;  %v3490_v46 = vld [vmem:[%s4101_s5] sm:$0xff]  }
  0x2f   : > { %v427_v49 = vrot.slane %v426_v48, 2 }
  0x31   : > { %v428_v50 = vadd.f32 %v427_v49, %v426_v48 }
  0x33   : > { %v429_v51 = vrot.slane %v428_v50, 1 }
  0x35   : > { %v430_v52 = vadd.f32 %v429_v51, %v428_v50  ;;  %v395_v50 = vld [vmem:[%s4097_s1] sm:$0x1] }
  0x37   : > { %2676 = vmatmul.mubr.msk.f32.vlgmr.msra.gmra.mrb[0].mxu1 %vm409_vm1, %v430_v52 }
  0x38   : > { %2889 = vmatpush3.bf16.msra.mxu1 %v2888_v14  ;;  %2686 = vmatprep.mubr.msk.f32.mxu1 %vm3184_vm0, %v3185_v6 }
  0x39   : > { %2890 = vmatprep.subr.bf16.mxu1 %v3183_v3 }
  0x3c   : > { %2892 = vmatpush3.bf16.msra.mxu1 %v2891_v21 }
  0x3d   : > { %2893 = vmatprep.subr.bf16.mxu1 %v3183_v3 }
 0x10a   : > { %v500_v53 = vpop.f32.mrb[0].mxu1 }
 0x10b   : > { %v2677_v54 = vpop.f32.mrb[1].mxu1  ;;  %2687 = vmatmul.mubr.msk.f32.vlgmr.msra.gmra.mrb[2].mxu1 %vm4107_vm2, %v500_v53 }
 0x10c   : > { %2895 = vmatpush3.bf16.msra.mxu1 %v3302_v4  ;;  %2705 = vmatprep.mubr.msk.f32.mxu1 %vm3184_vm0, %v3185_v6  ;;  %v2369_v54 = vld [vmem:[%s4098_s2] ss:$0 sm:$0xff] }
 0x10d   : > { %2896 = vmatprep.subr.bf16.mxu1 %v3183_v3 }
 0x110   : > { %2898 = vmatpush3.bf16.msra.mxu1 %v3323_v10 }
 0x111   : > { %2899 = vmatprep.subr.bf16.mxu1 %v3183_v3 }
 0x114   : > { %2901 = vmatpush3.bf16.msra.mxu1 %v2882_v17 }
 0x115   : > { %2902 = vmatprep.subr.bf16.mxu1 %v3183_v3 }
 0x118   : > { %2904 = vmatpush3.bf16.msra.mxu1 %v2885_v31 }
 0x119   : > { %2719 = vmatprep.subr.bf16.mxu1 %v3044_v38 }
 0x1de   : > { %v574_v58 = vpop.f32.mrb[2].mxu1 }
 0x1df   : > { %v581_v59 = vrot.slane %v574_v58, %v580_v57  ;;  %v2688_v60 = vpop.f32.mrb[3].mxu1 }
 0x1e1   : > { %v3410_v61 = vsub.f32 %v2536_v22, %v581_v59  ;;  %v3412_v62 = vsub.f32 %v2537_v23, %v581_v59  ;;  %v3414_v63 = vsub.f32 %v2540_v24, %v581_v59  ;;  %v3416_v0 = vsub.f32 %v2541_v25, %v581_v59 }
 0x1e2   : > { %v3418_v1 = vsub.f32 %v2544_v27, %v581_v59  ;;  %v3428_v5 = vsub.f32 %v2545_v28, %v581_v59  ;;  %v3436_v11 = vsub.f32 %v2548_v29, %v581_v59  ;;  %v3443_v15 = vsub.f32 %v2549_v30, %v581_v59 }
 0x1e3   : > { %v590_v2 = vmul.f32 %v3410_v61, %v3410_v61  ;;  %v591_v3 = vmul.f32 %v3412_v62, %v3412_v62  ;;  %v592_v4 = vmul.f32 %v3414_v63, %v3414_v63  ;;  %v593_v7 = vmul.f32 %v3416_v0, %v3416_v0 }
 0x1e4   : > { %v594_v12 = vmul.f32 %v3418_v1, %v3418_v1  ;;  %v595_v16 = vmul.f32 %v3428_v5, %v3428_v5  ;;  %v596_v19 = vmul.f32 %v3436_v11, %v3436_v11  ;;  %v597_v22 = vmul.f32 %v3443_v15, %v3443_v15 }
 0x1e5   : > { %v598_v8 = vsel %vm409_vm1, %v590_v2, 0.0  ;;  %v599_v9 = vsel %vm409_vm1, %v591_v3, 0.0  ;;  %v601_v13 = vsel %vm409_vm1, %v592_v4, 0.0  ;;  %v603_v17 = vsel %vm409_vm1, %v593_v7, 0.0 }
 0x1e6   : > { %v600_v10 = vadd.f32 %v599_v9, %v598_v8  ;;  %v605_v20 = vsel %vm409_vm1, %v594_v12, 0.0  ;;  %v607_v23 = vsel %vm409_vm1, %v595_v16, 0.0  ;;  %v609_v25 = vsel %vm409_vm1, %v596_v19, 0.0 }
 0x1e7   : > { %v611_v27 = vsel %vm409_vm1, %v597_v22, 0.0 }
 0x1e8   : > { %v602_v14 = vadd.f32 %v601_v13, %v600_v10 }
 0x1ea   : > { %v604_v18 = vadd.f32 %v603_v17, %v602_v14 }
 0x1ec   : > { %v606_v21 = vadd.f32 %v605_v20, %v604_v18 }
 0x1ee   : > { %v608_v24 = vadd.f32 %v607_v23, %v606_v21 }
 0x1f0   : > { %v610_v26 = vadd.f32 %v609_v25, %v608_v24 }
 0x1f2   : > { %v612_v28 = vadd.f32 %v611_v27, %v610_v26 }
 0x1f4   : > { %v613_v29 = vrot.slane %v612_v28, 4 }
 0x1f6   : > { %v614_v30 = vadd.f32 %v613_v29, %v612_v28 }
 0x1f8   : > { %v615_v31 = vrot.slane %v614_v30, 2 }
 0x1fa   : > { %v616_v32 = vadd.f32 %v615_v31, %v614_v30 }
 0x1fc   : > { %v617_v33 = vrot.slane %v616_v32, 1 }
 0x1fe   : > { %v618_v34 = vadd.f32 %v617_v33, %v616_v32  ;;  %v851_v33 = vadd.s32 8, %v3405_v56 }
 0x200   : > { %2706 = vmatmul.mubr.msk.f32.vlgmr.msra.gmra.mrb[4].mxu1 %vm409_vm1, %v618_v34  ;;  %v852_v34 = vadd.s32 16, %v3405_v56 }
 0x201   : > { %2720 = vmatpush3.bf16.msra.mxu1 %v3044_v38  ;;  %v859_v38 = vand.u32 7, %v851_v33  ;;  %v3680_v33 = vadd.s32 56, %v3405_v56 }
 0x202   : > { %2721 = vmatprep.subr.bf16.mxu1 %v3046_v40 }
 0x203   : > { %vm3555_vm5 = vcmp.ge.s32.totalorder %v859_v38, 1  ;;  %vm3599_vm8 = vcmp.le.s32.totalorder %v859_v38, 6 }
 0x205   : > { %2722 = vmatpush3.bf16.msra.mxu1 %v3046_v40 }
 0x206   : > { %2723 = vmatprep.subr.bf16.mxu1 %v3048_v42 }
 0x209   : > { %2724 = vmatpush3.bf16.msra.mxu1 %v3048_v42  ;;  %v858_v42 = vand.u32 7, %v3405_v56 }
 0x20a   : > { %2725 = vmatprep.subr.bf16.mxu1 %v3050_v44 }
 0x20b   : > { %vm3570_vm6 = vcmp.le.s32.totalorder %v858_v42, 6 }
 0x20d   : > { %2726 = vmatpush3.bf16.msra.mxu1 %v3050_v44 }
 0x20e   : > { %2735 = vmatprep.subr.bf16.mxu1 %v3490_v46 }
 0x2d3   : > { %v688_v35 = vpop.f32.mrb[4].mxu1 }
 0x2d4   : > { %v2707_v36 = vpop.f32.mrb[5].mxu1  ;;  %2717 = vmatmul.mubr.msk.f32.vlgmr.msra.gmra.mrb[0].mxu0 %vm4107_vm2, %v688_v35  ;;  %v853_v35 = vadd.s32 24, %v3405_v56 }
 0x2d5   : > { %2784 = vmatpush3.bf16.msra.mxu0 %v3043_v37  ;;  %v3532_v36 = vadd.s32 32, %v3405_v56 }
 0x2d6   : > { %2785 = vmatprep.subr.bf16.mxu0 %v3045_v39 }
 0x2d9   : > { %2786 = vmatpush3.bf16.msra.mxu0 %v3045_v39  ;;  %v3535_v39 = vadd.s32 40, %v3405_v56 }
 0x2da   : > { %2787 = vmatprep.subr.bf16.mxu0 %v3047_v41 }
 0x2dd   : > { %2788 = vmatpush3.bf16.msra.mxu0 %v3047_v41 }
 0x2de   : > { %2789 = vmatprep.subr.bf16.mxu0 %v3049_v43 }
 0x2e1   : > { %2790 = vmatpush3.bf16.msra.mxu0 %v3049_v43 }
 0x2e2   : > { %2799 = vmatprep.subr.bf16.mxu0 %v3485_v45 }
 0x3a7   : > { %v761_v47 = vpop.f32.mrb[0].mxu0 }
 0x3a8   : > { %v762_v48 = vadd.f32 1e-06, %v761_v47  ;;  %v2718_v49 = vpop.f32.mrb[1].mxu0  ;;  %v860_v47 = vand.u32 7, %v852_v34 }
 0x3aa   : > { %3085 = vrsqrt.f32 %v762_v48  ;;  %v861_v48 = vand.u32 7, %v853_v35  ;;  %vm3584_vm7 = vcmp.ge.s32.totalorder %v860_v47, 1  ;;  %vm3603_vm9 = vcmp.le.s32.totalorder %v860_v47, 6 }
 0x3ab   : > { %v4136_v47 = vmov 0 }
 0x3ac   : > { %vm3607_vm10 = vcmp.le.s32.totalorder %v861_v48, 6  ;;  %vm3629_vm11 = vcmp.ge.s32.totalorder %v861_v48, 1 }
 0x3b4   : > { %v3086_v51 = vpop.eup %3085 }
 0x3b5   : > { %v766_v52 = vmul.f32 %v3086_v51, %v395_v50 }
 0x3b7   : > { %v770_v53 = vrot.slane %v766_v52, %v580_v57  ;;  %v862_v52 = vand.u32 7, %v3532_v36 }
 0x3b9   : > { %v771_v55 = vmul.f32 %v770_v53, %v3410_v61  ;;  %v772_v58 = vmul.f32 %v770_v53, %v3412_v62  ;;  %v773_v59 = vmul.f32 %v770_v53, %v3414_v63  ;;  %v774_v60 = vmul.f32 %v770_v53, %v3416_v0 }
 0x3ba   : > { %v775_v2 = vmul.f32 %v770_v53, %v3418_v1  ;;  %v776_v3 = vmul.f32 %v770_v53, %v3428_v5  ;;  %v777_v4 = vmul.f32 %v770_v53, %v3436_v11  ;;  %v778_v57 = vmul.f32 %v770_v53, %v3443_v15 }
 0x3bb   : > { %v785_v7 = vadd.f32 %v2369_v54, %v771_v55  ;;  %v786_v8 = vadd.f32 %v2369_v54, %v772_v58  ;;  %v3510_v9 = vadd.f32 %v2369_v54, %v773_v59  ;;  %v3512_v10 = vadd.f32 %v2369_v54, %v774_v60  ;;  %v3075_v58 = vld [vmem:[%s4101_s5 + $0x100] sm:$0xff]  }
 0x3bc   : > { %v3514_v61 = vadd.f32 %v2369_v54, %v775_v2  ;;  %v3516_v62 = vadd.f32 %v2369_v54, %v776_v3  ;;  %v3519_v12 = vadd.f32 %v2369_v54, %v777_v4  ;;  %v3522_v11 = vadd.f32 %v2369_v54, %v778_v57 }
 0x3bd   : > { %v2370_v63 = vmul.f32 -1.442695, %v785_v7  ;;  %v2371_v0 = vmul.f32 -1.442695, %v786_v8  ;;  %v2372_v1 = vmul.f32 -1.442695, %v3510_v9 }
 0x3be   : > { %v2373_v5 = vmul.f32 -1.442695, %v3512_v10  ;;  %v2374_v13 = vmul.f32 -1.442695, %v3514_v61  ;;  %v2375_v14 = vmul.f32 -1.442695, %v3516_v62 }
 0x3bf   : > { %3087 = vpow2.f32 %v2370_v63  ;;  %v2376_v15 = vmul.f32 -1.442695, %v3519_v12  ;;  %v2377_v16 = vmul.f32 -1.442695, %v3522_v11  ;;  %v863_v59 = vand.u32 7, %v3535_v39 }
 0x3c0   : > { %3089 = vpow2.f32 %v2371_v0  ;;  %v4118_v4 = vmov 0  ;;  %vm3633_vm12 = vcmp.ge.s32.totalorder %v862_v52, 1  ;;  %vm3661_vm14 = vcmp.le.s32.totalorder %v862_v52, 6 }
 0x3c1   : > { %3091 = vpow2.f32 %v2372_v1  ;;  %v4119_v4 = vsel %vm3570_vm6, 4294967295, %v4118_v4  ;;  %vm3639_vm13 = vcmp.ge.s32.totalorder %v863_v59, 1  ;;  %vm3707_vm15 = vcmp.le.s32.totalorder %v863_v59, 6 }
 0x3c2   : > { %3093 = vpow2.f32 %v2373_v5  ;;  %v3054_v5 = vld [vmem:[%s4101_s5 + $0x8] sm:$0xff]   ;;  %v4137_v47 = vsel %vm3707_vm15, 4294967295, %v4136_v47 }
 0x3c3   : > { %3095 = vpow2.f32 %v2374_v13 }
 0x3c4   : > { %3097 = vpow2.f32 %v2375_v14  ;;  %v3080_v14 = vld [vmem:[%s4104_s8 + $0x8] sm:$0xff]  }
 0x3c5   : > { %3099 = vpow2.f32 %v2376_v15 }
 0x3c6   : > { %3101 = vpow2.f32 %v2377_v16 }
 0x3c9   : > { %v3088_v17 = vpop.eup %3087 }
 0x3ca   : > { %v3090_v18 = vpop.eup %3089  ;;  %v817_v19 = vadd.f32 1.0, %v3088_v17 }
 0x3cb   : > { %v3092_v20 = vpop.eup %3091  ;;  %v818_v21 = vadd.f32 1.0, %v3090_v18 }
 0x3cc   : > { %v3094_v22 = vpop.eup %3093  ;;  %3103 = vrcp.f32 %v817_v19  ;;  %v819_v23 = vadd.f32 1.0, %v3092_v20 }
 0x3cd   : > { %v3096_v24 = vpop.eup %3095  ;;  %3105 = vrcp.f32 %v818_v21  ;;  %v820_v25 = vadd.f32 1.0, %v3094_v22 }
 0x3ce   : > { %v3098_v26 = vpop.eup %3097  ;;  %3107 = vrcp.f32 %v819_v23  ;;  %v821_v27 = vadd.f32 1.0, %v3096_v24 }
 0x3cf   : > { %v3100_v28 = vpop.eup %3099  ;;  %3109 = vrcp.f32 %v820_v25  ;;  %v822_v29 = vadd.f32 1.0, %v3098_v26 }
 0x3d0   : > { %v3102_v30 = vpop.eup %3101  ;;  %3111 = vrcp.f32 %v821_v27  ;;  %v823_v31 = vadd.f32 1.0, %v3100_v28 }
 0x3d1   : > { %3113 = vrcp.f32 %v822_v29  ;;  %v824_v32 = vadd.f32 1.0, %v3102_v30  ;;  %v3666_v29 = vadd.s32 48, %v3405_v56 }
 0x3d2   : > { %3115 = vrcp.f32 %v823_v31 }
 0x3d3   : > { %3117 = vrcp.f32 %v824_v32 }
 0x3d6   : > { %v3104_v37 = vpop.eup %3103 }
 0x3d7   : > { %v3106_v40 = vpop.eup %3105  ;;  %v3537_v41 = vmul.f32 %v3104_v37, %v785_v7 }
 0x3d8   : > { %v3108_v43 = vpop.eup %3107  ;;  %v3540_v44 = vmul.f32 %v3106_v40, %v786_v8 }
 0x3d9   : > { %v3110_v49 = vpop.eup %3109  ;;  %v951_v50 = vpack.c.bf16 %v3537_v41, %v3185_v6  ;;  %v3546_v51 = vmul.f32 %v3108_v43, %v3510_v9  ;;  %v1166_v57 = vrot.slane %v3537_v41, 1  ;;  %v898_v19 = vrot.slane %v3537_v41, 7 }
 0x3da   : > { %v3112_v53 = vpop.eup %3111  ;;  %v1451_v54 = vpack.c.bf16 %v3540_v44, %v3537_v41  ;;  %v3553_v55 = vmul.f32 %v3110_v49, %v3512_v10  ;;  %v3053_v10 = vld [vmem:[%s4101_s5 + $0xa8] sm:$0xff]   ;;  %v1167_v63 = vrot.slane %v3540_v44, 1  ;;  %v899_v20 = vrot.slane %v3540_v44, 7  ;;  %v3058_v49 = vld [vmem:[%s4101_s5 + $0x18] sm:$0xff]  }
 0x3db   : > { %v3114_v60 = vpop.eup %3113  ;;  %2727 = vmatprep.mubr.msk.bf16.mxu1 %vm409_vm1, %v951_v50  ;;  %v3563_v2 = vpack.c.bf16 %v3546_v51, %v3540_v44  ;;  %v3566_v3 = vmul.f32 %v3112_v53, %v3514_v61  ;;  %v1168_v0 = vrot.slane %v3546_v51, 1  ;;  %v900_v27 = vrot.slane %v3546_v51, 7  ;;  %v3057_v44 = vld [vmem:[%s4101_s5 + $0xb8] sm:$0xff]   ;;  %v3076_v61 = vld [vmem:[%s4101_s5 + $0x108] sm:$0xff]  }
 0x3dc   : > { %v3116_v7 = vpop.eup %3115  ;;  %2791 = vmatprep.mubr.msk.bf16.mxu0 %vm409_vm1, %v1451_v54  ;;  %v1452_v8 = vpack.c.bf16 %v3553_v55, %v3546_v51  ;;  %v3579_v9 = vmul.f32 %v3114_v60, %v3516_v62  ;;  %v1169_v23 = vrot.slane %v3553_v55, 1  ;;  %v3657_v25 = vsel %vm4108_vm4, %v1166_v57, %v1167_v63 }
 0x3dd   : > { %v3118_v1 = vpop.eup %3117  ;;  %2728 = vmatmul.mubr.msk.bf16.vlgmr.msra.gmra.mrb[8].mxu1 %vm409_vm1, %v3563_v2  ;;  %v3594_v62 = vpack.c.bf16 %v3566_v3, %v3553_v55  ;;  %v3616_v17 = vmul.f32 %v3116_v7, %v3519_v12  ;;  %v3651_v24 = vsel %vm4108_vm4, %v1167_v63, %v1168_v0  ;;  %v1170_v26 = vrot.slane %v3566_v3, 1  ;;  %v3077_v12 = vld [vmem:[%s4101_s5 + $0x110] sm:$0xff]  }
 0x3de   : > { %2792 = vmatmul.mubr.msk.bf16.vlgmr.msra.gmra.mrb[4].mxu0 %vm409_vm1, %v1452_v8  ;;  %2736 = vmatpush3.bf16.msra.mxu1 %v3490_v46  ;;  %v1453_v16 = vpack.c.bf16 %v3579_v9, %v3566_v3  ;;  %v3619_v18 = vmul.f32 %v3118_v1, %v3522_v11  ;;  %v3056_v46 = vld [vmem:[%s4101_s5 + $0x10] sm:$0xff]   ;;  %v901_v32 = vrot.slane %v3553_v55, 7  ;;  %v1573_v35 = vsel %vm3570_vm6, %v3657_v25, 0.0 }
 0x3df   : > { %2800 = vmatpush3.bf16.msra.mxu0 %v3485_v45  ;;  %2731 = vmatprep.mubr.msk.bf16.mxu1 %vm409_vm1, %v3594_v62  ;;  %v4132_v45 = vmov 0  ;;  %v3055_v11 = vld [vmem:[%s4101_s5 + $0xb0] sm:$0xff]   ;;  %v3670_v30 = vpack.c.bf16 %v3616_v17, %v3579_v9  ;;  %v1574_v36 = vsel %vm3599_vm8, %v3651_v24, 0.0  ;;  %v902_v37 = vrot.slane %v3566_v3, 7  ;;  %v3060_v3 = vld [vmem:[%s4101_s5 + $0x40] sm:$0xff]  }
 0x3e0   : > { %v4133_v45 = vsel %vm3639_vm13, 4294967295, %v4132_v45  ;;  %2795 = vmatprep.mubr.msk.bf16.mxu0 %vm409_vm1, %v1453_v16  ;;  %2801 = vmatprep.subr.bf16.mxu0 %v3053_v10  ;;  %v905_v22 = vrot.slane %v3619_v18, 7  ;;  %v1454_v38 = vpack.c.bf16 %v3619_v18, %v3616_v17  ;;  %v3696_v40 = vsel %vm4112_vm3, %v898_v19, %v899_v20 }
 0x3e1   : > { %2737 = vmatprep.subr.bf16.mxu1 %v3054_v5  ;;  %v3700_v43 = vsel %vm4108_vm4, %v1168_v0, %v1169_v23  ;;  %v3719_v50 = vsel %vm4112_vm3, %v899_v20, %v900_v27  ;;  %v3723_v39 = vsel %vm4108_vm4, %v1169_v23, %v1170_v26  ;;  %v3727_v51 = vsel %vm4112_vm3, %v900_v27, %v901_v32 }
 0x3e2   : > { %2738 = vmatpush3.bf16.msra.mxu1 %v3054_v5  ;;  %v3676_v31 = vsel %vm4112_vm3, %v905_v22, %v898_v19  ;;  %v1581_v52 = vpack.c.bf16 %v1574_v36, %v1573_v35  ;;  %v3732_v53 = vsel %vm4112_vm3, %v901_v32, %v902_v37  ;;  %v1171_v54 = vrot.slane %v3579_v9, 1 }
 0x3e3   : > { %2802 = vmatpush3.bf16.msra.mxu0 %v3053_v10  ;;  %2739 = vmatprep.subr.bf16.mxu1 %v3056_v46  ;;  %v924_v34 = vsel %vm3555_vm5, %v3676_v31, 0.0  ;;  %v864_v55 = vand.u32 7, %v3666_v29  ;;  %v1575_v59 = vsel %vm3603_vm9, %v3700_v43, 0.0  ;;  %v925_v60 = vsel %vm3584_vm7, %v3696_v40, 0.0  ;;  %v3059_v10 = vld [vmem:[%s4101_s5 + $0xc0] sm:$0xff]  }
 0x3e4   : > { %2803 = vmatprep.subr.bf16.mxu0 %v3055_v11  ;;  %v931_v48 = vpack.c.bf16 %v924_v34, %v3185_v6  ;;  %v1172_v7 = vrot.slane %v3616_v17, 1  ;;  %v865_v8 = vand.u32 7, %v3680_v33  ;;  %v926_v63 = vsel %vm3629_vm11, %v3719_v50, 0.0  ;;  %v3062_v34 = vld [vmem:[%s4101_s5 + $0x48] sm:$0xff]  }
 0x3e5   : > { %2732 = vmatmul.mubr.msk.bf16.gmra.mrb[12].mxu1 %vm409_vm1, %v3670_v30  ;;  %v1576_v0 = vsel %vm3607_vm10, %v3723_v39, 0.0  ;;  %v927_v1 = vsel %vm3633_vm12, %v3727_v51, 0.0  ;;  %v3763_v5 = vsel %vm4108_vm4, %v1170_v26, %v1171_v54  ;;  %v928_v16 = vsel %vm3639_vm13, %v3732_v53, 0.0 }
 0x3e6   : > { %2796 = vmatmul.mubr.msk.bf16.gmra.mrb[8].mxu0 %vm409_vm1, %v1454_v38  ;;  %2740 = vmatpush3.bf16.msra.mxu1 %v3056_v46  ;;  %v3770_v19 = vsel %vm4108_vm4, %v1171_v54, %v1172_v7  ;;  %v903_v46 = vrot.slane %v3579_v9, 7  ;;  %v904_v20 = vrot.slane %v3616_v17, 7  ;;  %v932_v23 = vpack.c.bf16 %v926_v63, %v925_v60  ;;  %v3061_v9 = vld [vmem:[%s4101_s5 + $0xc8] sm:$0xff]   ;;  %v3063_v54 = vld [vmem:[%s4101_s5 + $0xd0] sm:$0xff]  }
 0x3e7   : > { %2804 = vmatpush3.bf16.msra.mxu0 %v3055_v11  ;;  %2743 = vmatprep.mubr.msk.bf16.mxu1 %vm409_vm1, %v931_v48  ;;  %v1173_v11 = vrot.slane %v3619_v18, 1  ;;  %v1577_v26 = vsel %vm3661_vm14, %v3763_v5, 0.0  ;;  %v1578_v27 = vsel %vm3707_vm15, %v3770_v19, 0.0  ;;  %v1582_v29 = vpack.c.bf16 %v1576_v0, %v1575_v59  ;;  %v3072_v17 = vld [vmem:[%s4101_s5 + $0x70] sm:$0xff]  }
 0x3e8   : > { %2807 = vmatprep.mubr.msk.bf16.mxu0 %vm409_vm1, %v1581_v52  ;;  %2805 = vmatprep.subr.bf16.mxu0 %v3057_v44  ;;  %v933_v32 = vpack.c.bf16 %v928_v16, %v927_v1  ;;  %vm3784_vm0 = vcmp.ge.s32.totalorder %v864_v55, 1  ;;  %vm3792_vm2 = vcmp.ge.s32.totalorder %v865_v8, 1  ;;  %v3800_v36 = vsel %vm4112_vm3, %v903_v46, %v904_v20  ;;  %v3066_v1 = vld [vmem:[%s4101_s5 + $0x58] sm:$0xff]  }
 0x3e9   : > { %2741 = vmatprep.subr.bf16.mxu1 %v3058_v49  ;;  %v3804_v38 = vsel %vm4112_vm3, %v902_v37, %v903_v46  ;;  %vm3806_vm4 = vcmp.le.s32.totalorder %v864_v55, 6  ;;  %v1583_v48 = vpack.c.bf16 %v1578_v27, %v1577_v26  ;;  %vm3812_vm6 = vcmp.le.s32.totalorder %v865_v8, 6  ;;  %v3067_v46 = vld [vmem:[%s4101_s5 + $0xe0] sm:$0xff]  }
 0x3ea   : > { %2742 = vmatpush3.bf16.msra.mxu1 %v3058_v49  ;;  %vm4146_vm13 = vcmp.lt.s32.totalorder %v3405_v56, 7  ;;  %v929_v55 = vsel %vm3784_vm0, %v3804_v38, 0.0  ;;  %v930_v41 = vsel %vm3792_vm2, %v3800_v36, 0.0  ;;  %v1194_v26 = vsel %vm3607_vm10, %v3700_v43, 0.0 }
 0x3eb   : > { %2806 = vmatpush3.bf16.msra.mxu0 %v3057_v44  ;;  %2751 = vmatprep.subr.bf16.mxu1 %v3060_v3  ;;  %v3818_v52 = vsel %vm4146_vm13, %v1172_v7, %v1173_v11  ;;  %vm4147_vm3 = vmmov %vm4146_vm13  ;;  %v1192_v7 = vsel %vm3599_vm8, %v3657_v25, 0.0  ;;  %v934_v8 = vpack.c.bf16 %v930_v41, %v929_v55  ;;  %v3065_v25 = vld [vmem:[%s4101_s5 + $0xd8] sm:$0xff]   ;;  %v1713_v27 = vsel %vm3584_vm7, %v3727_v51, 0.0 }
 0x3ec   : > { %2815 = vmatprep.subr.bf16.mxu0 %v3059_v10  ;;  %v3824_v37 = vsel %vm4147_vm3, %v1173_v11, %v1166_v57  ;;  %v3064_v57 = vld [vmem:[%s4101_s5 + $0x50] sm:$0xff]   ;;  %vm3841_vm3 = vcmp.ge.s32.totalorder %v858_v42, 1  ;;  %v1579_v60 = vsel %vm3806_vm4, %v3818_v52, 0.0  ;;  %v1199_v0 = vpack.c.bf16 %v1192_v7, %v3185_v6  ;;  %v3068_v11 = vld [vmem:[%s4101_s5 + $0x60] sm:$0xff]  }
 0x3ed   : > { %2744 = vmatmul.mubr.msk.bf16.vlgmr.msra.gmra.mrb[8].mxu1 %vm409_vm1, %v932_v23  ;;  %v1711_v42 = vsel %vm3841_vm3, %v3696_v40, 0.0  ;;  %v1193_v23 = vsel %vm3603_vm9, %v3651_v24, 0.0  ;;  %vm4150_vm13 = vnez %v4133_v45  ;;  %v1324_v59 = vsel %vm3629_vm11, %v3727_v51, 0.0 }
 0x3ee   : > { %2808 = vmatmul.mubr.msk.bf16.vlgmr.msra.gmra.mrb[4].mxu0 %vm409_vm1, %v1582_v29  ;;  %2747 = vmatprep.mubr.msk.bf16.mxu1 %vm409_vm1, %v933_v32  ;;  %v1714_v29 = vsel %vm3629_vm11, %v3732_v53, 0.0  ;;  %v1195_v32 = vsel %vm3661_vm14, %v3723_v39, 0.0  ;;  %v1327_v45 = vsel %vm3784_vm0, %v3800_v36, 0.0  ;;  %v1852_v51 = vpack.c.bf16 %v3185_v6, %v3619_v18 }
 0x3ef   : > { %2816 = vmatpush3.bf16.msra.mxu0 %v3059_v10  ;;  %2752 = vmatpush3.bf16.msra.mxu1 %v3060_v3  ;;  %v1580_v3 = vsel %vm3812_vm6, %v3824_v37, 0.0  ;;  %v1712_v10 = vsel %vm3555_vm5, %v3719_v50, 0.0  ;;  %v1720_v55 = vpack.c.bf16 %v1714_v29, %v1713_v27  ;;  %v1981_v13 = vsel %vm3603_vm9, %v3723_v39, 0.0  ;;  %v2514_v27 = vld [vmem:[%s4102_s6] ss:$0 sm:$0xff] }
 0x3f0   : > { %2811 = vmatprep.mubr.msk.bf16.mxu0 %vm409_vm1, %v1583_v48  ;;  %2817 = vmatprep.subr.bf16.mxu0 %v3061_v9  ;;  %v1584_v63 = vpack.c.bf16 %v1580_v3, %v1579_v60  ;;  %v1719_v16 = vpack.c.bf16 %v1712_v10, %v1711_v42  ;;  %v1716_v48 = vsel %vm4150_vm13, %v3800_v36, 0.0  ;;  %v3070_v60 = vld [vmem:[%s4101_s5 + $0x68] sm:$0xff]   ;;  %v1197_v42 = vsel %vm3806_vm4, %v3770_v19, 0.0 }
 0x3f1   : > { %2753 = vmatprep.subr.bf16.mxu1 %v3062_v34  ;;  %v1322_v10 = vsel %vm3555_vm5, %v3696_v40, 0.0  ;;  %v1323_v40 = vsel %vm3584_vm7, %v3719_v50, 0.0  ;;  %vm4152_vm5 = vnez %v4119_v4  ;;  %v3079_v4 = vld [vmem:[%s4104_s8] sm:$0xff]   ;;  %v1982_v18 = vsel %vm3607_vm10, %v3763_v5, 0.0 }
 0x3f2   : > { %v1979_v50 = vsel %vm4152_vm5, %v3651_v24, 0.0  ;;  %v1983_v24 = vsel %vm3661_vm14, %v3770_v19, 0.0  ;;  %v1988_v36 = vpack.c.bf16 %v1982_v18, %v1981_v13  ;;  %v1985_v28 = vsel %vm3806_vm4, %v3824_v37, 0.0  ;;  %v3083_v19 = vld [vmem:[%s3390_s21 + $0x10] sm:$0xff]  }
 0x3f3   : > { %2818 = vmatpush3.bf16.msra.mxu0 %v3061_v9  ;;  %2754 = vmatpush3.bf16.msra.mxu1 %v3062_v34  ;;  %v1196_v9 = vsel %vm3707_vm15, %v3763_v5, 0.0  ;;  %v1715_v34 = vsel %vm3633_vm12, %v3804_v38, 0.0  ;;  %vm4151_vm15 = vcmp.lt.s32.totalorder %v3405_v56, 1  ;;  %v1198_v56 = vsel %vm3812_vm6, %v3818_v52, 0.0  ;;  %v3082_v5 = vld [vmem:[%s3390_s21 + $0x8] sm:$0xff]  }
 0x3f4   : > { %2819 = vmatprep.subr.bf16.mxu0 %v3063_v54  ;;  %2755 = vmatprep.subr.bf16.mxu1 %v3064_v57  ;;  %v1201_v41 = vpack.c.bf16 %v1196_v9, %v1195_v32  ;;  %v1721_v3 = vpack.c.bf16 %v1716_v48, %v1715_v34  ;;  %v907_v7 = vsel %vm4151_vm15, %v904_v20, %v905_v22  ;;  %v1321_v20 = vsel %vm3841_vm3, %v3676_v31, 0.0  ;;  %v3074_v31 = vld [vmem:[%s4101_s5 + $0x78] sm:$0xff]   ;;  %v2515_v9 = vld [vmem:[%s4105_s9] ss:$0 sm:$0xff] }
 0x3f5   : > { %2748 = vmatmul.mubr.msk.bf16.gmra.mrb[12].mxu1 %vm409_vm1, %v934_v8  ;;  %v3071_v8 = vld [vmem:[%s4101_s5 + $0xf0] sm:$0xff]   ;;  %v1717_v22 = vsel %vm3784_vm0, %v907_v7, 0.0  ;;  %v1202_v49 = vpack.c.bf16 %v1198_v56, %v1197_v42  ;;  %v1990_v39 = vpack.c.bf16 %v3185_v6, %v1985_v28  ;;  %vm4154_vm6 = vcmask 261120  }
 0x3f6   : > { %2812 = vmatmul.mubr.msk.bf16.gmra.mrb[8].mxu0 %vm409_vm1, %v1584_v63  ;;  %2759 = vmatprep.mubr.msk.bf16.mxu1 %vm409_vm1, %v1199_v0  ;;  %v1722_v63 = vpack.c.bf16 %v3185_v6, %v1717_v22  ;;  %v1329_v0 = vpack.c.bf16 %v1322_v10, %v1321_v20  ;;  %vm4155_vm7 = vmmov %vm4154_vm6 }
 0x3f7   : > { %2820 = vmatpush3.bf16.msra.mxu0 %v3063_v54  ;;  %2756 = vmatpush3.bf16.msra.mxu1 %v3064_v57  ;;  %v1200_v54 = vpack.c.bf16 %v1194_v26, %v1193_v23  ;;  %v3069_v57 = vld [vmem:[%s4101_s5 + $0xe8] sm:$0xff]   ;;  %vm4157_vm9 = vmmov %vm4154_vm6 }
 0x3f8   : > { %2823 = vmatprep.mubr.msk.bf16.mxu0 %vm409_vm1, %v1719_v16  ;;  %2821 = vmatprep.subr.bf16.mxu0 %v3065_v25  ;;  %v1330_v16 = vpack.c.bf16 %v1324_v59, %v1323_v40 }
 0x3f9   : > { %2757 = vmatprep.subr.bf16.mxu1 %v3066_v1 }
 0x3fb   : > { %2822 = vmatpush3.bf16.msra.mxu0 %v3065_v25  ;;  %2758 = vmatpush3.bf16.msra.mxu1 %v3066_v1  ;;  %v3073_v25 = vld [vmem:[%s4101_s5 + $0xf8] sm:$0xff]   ;;  %v1325_v1 = vsel %vm3633_vm12, %v3732_v53, 0.0 }
 0x3fc   : > { %2831 = vmatprep.subr.bf16.mxu0 %v3067_v46  ;;  %2767 = vmatprep.subr.bf16.mxu1 %v3068_v11  ;;  %v3078_v53 = vld [vmem:[%s4101_s5 + $0x118] sm:$0xff]  }
 0x3fe   : > { %2760 = vmatmul.mubr.msk.bf16.vlgmr.msra.gmra.mrb[8].mxu1 %vm409_vm1, %v1200_v54  ;;  %2824 = vmatmul.mubr.msk.bf16.vlgmr.msra.gmra.mrb[4].mxu0 %vm409_vm1, %v1720_v55 }
 0x3ff   : > { %2832 = vmatpush3.bf16.msra.mxu0 %v3067_v46  ;;  %2763 = vmatprep.mubr.msk.bf16.mxu1 %vm409_vm1, %v1201_v41 }
 0x400   : > { %2768 = vmatpush3.bf16.msra.mxu1 %v3068_v11  ;;  %2827 = vmatprep.mubr.msk.bf16.mxu0 %vm409_vm1, %v1721_v3 }
 0x401   : > { %2833 = vmatprep.subr.bf16.mxu0 %v3069_v57  ;;  %2769 = vmatprep.subr.bf16.mxu1 %v3070_v60 }
 0x403   : > { %2834 = vmatpush3.bf16.msra.mxu0 %v3069_v57 }
 0x404   : > { %2770 = vmatpush3.bf16.msra.mxu1 %v3070_v60  ;;  %2835 = vmatprep.subr.bf16.mxu0 %v3071_v8 }
 0x405   : > { %2771 = vmatprep.subr.bf16.mxu1 %v3072_v17 }
 0x406   : > { %2764 = vmatmul.mubr.msk.bf16.gmra.mrb[12].mxu1 %vm409_vm1, %v1202_v49  ;;  %2828 = vmatmul.mubr.msk.bf16.gmra.mrb[8].mxu0 %vm409_vm1, %v1722_v63 }
 0x407   : > { %2836 = vmatpush3.bf16.msra.mxu0 %v3071_v8  ;;  %2775 = vmatprep.mubr.msk.bf16.mxu1 %vm409_vm1, %v1329_v0 }
 0x408   : > { %2772 = vmatpush3.bf16.msra.mxu1 %v3072_v17  ;;  %2839 = vmatprep.mubr.msk.bf16.mxu0 %vm409_vm1, %v3563_v2  ;;  %v1326_v2 = vsel %vm4150_vm13, %v3804_v38, 0.0  ;;  %v3084_v38 = vld [vmem:[%s3390_s21 + $0x18] sm:$0xff]  }
 0x409   : > { %2837 = vmatprep.subr.bf16.mxu0 %v3073_v25  ;;  %2773 = vmatprep.subr.bf16.mxu1 %v3074_v31  ;;  %v1331_v21 = vpack.c.bf16 %v1326_v2, %v1325_v1 }
 0x40b   : > { %2838 = vmatpush3.bf16.msra.mxu0 %v3073_v25 }
 0x40c   : > { %2774 = vmatpush3.bf16.msra.mxu1 %v3074_v31  ;;  %2847 = vmatprep.subr.bf16.mxu0 %v3075_v58 }
 0x40e   : > { %2840 = vmatmul.mubr.msk.bf16.vlgmr.msra.gmra.mrb[4].mxu0 %vm409_vm1, %v3594_v62  ;;  %v1328_v62 = vsel %vm3792_vm2, %v907_v7, 0.0  ;;  %vm4153_vm2 = vnez %v4137_v47  ;;  %v3081_v47 = vld [vmem:[%s3390_s21] sm:$0xff]   ;;  %s3123_s21 = sshll.u32 %s3186_s27, 4  ;;  %s3124_s21 = int_to_ptr.vmem [resolvable:$false] %s3123_s21 }
 0x40f   : > { %2776 = vmatmul.mubr.msk.bf16.vlgmr.msra.gmra.mrb[8].mxu1 %vm409_vm1, %v1330_v16  ;;  %2848 = vmatpush3.bf16.msra.mxu0 %v3075_v58  ;;  %v1332_v33 = vpack.c.bf16 %v1328_v62, %v1327_v45  ;;  %s3125_s29 = scalar_lea.vmem %s3124_s21, 2048  ;;  %p3126_p0 = scmp.lt.s32.totalorder %s4048_s12, %s3124_s21 }
 0x410   : > { %2779 = vmatprep.mubr.msk.bf16.mxu1 %vm409_vm1, %v1331_v21  ;;  %2843 = vmatprep.mubr.msk.bf16.mxu0 %vm409_vm1, %v3670_v30  ;;  %v1980_v30 = vsel %vm3599_vm8, %v3700_v43, 0.0  ;;  %v1984_v43 = vsel %vm4153_vm2, %v3818_v52, 0.0  ;;  %vm4156_vm8 = vmmov %vm4154_vm6  ;;  %p3127_p1 = scmp.lt.s32.totalorder %s3125_s29, %s3119_s25 }
 0x411   : > { %2849 = vmatprep.subr.bf16.mxu0 %v3076_v61  ;;  %v1987_v35 = vpack.c.bf16 %v1980_v30, %v1979_v50  ;;  %v1989_v15 = vpack.c.bf16 %v1984_v43, %v1983_v24 }
 0x412   : > { %p3128_p2 = por %p3127_p1, %p3126_p0 }
 0x413   : > { %2850 = vmatpush3.bf16.msra.mxu0 %v3076_v61 }
 0x414   : > { %2851 = vmatprep.subr.bf16.mxu0 %v3077_v12  ;;  %p3129_p3 = pnand %p3128_p2, %p3122_p13 }
 0x416   : > { %2844 = vmatmul.mubr.msk.bf16.gmra.mrb[8].mxu0 %vm409_vm1, %v1852_v51 }
 0x417   : > { %2780 = vmatmul.mubr.msk.bf16.gmra.mrb[12].mxu1 %vm409_vm1, %v1332_v33  ;;  %2852 = vmatpush3.bf16.msra.mxu0 %v3077_v12 }
 0x418   : > { %2855 = vmatprep.mubr.msk.bf16.mxu0 %vm409_vm1, %v1987_v35  ;;  %2853 = vmatprep.subr.bf16.mxu0 %v3078_v53 }
 0x41b   : > { %2854 = vmatpush3.bf16.msra.mxu0 %v3078_v53 }
 0x41c   : > { %2863 = vmatprep.subr.bf16.mxu0 %v3079_v4 }
 0x41e   : > { %2856 = vmatmul.mubr.msk.bf16.vlgmr.msra.gmra.mrb[4].mxu0 %vm409_vm1, %v1988_v36 }
 0x41f   : > { %2864 = vmatpush3.bf16.msra.mxu0 %v3079_v4  ;;  %2859 = vmatprep.mubr.msk.bf16.mxu0 %vm409_vm1, %v1989_v15 }
 0x420   : > { %2865 = vmatprep.subr.bf16.mxu0 %v3080_v14 }
 0x423   : > { %2866 = vmatpush3.bf16.msra.mxu0 %v3080_v14 }
 0x426   : > { %2860 = vmatmul.mubr.msk.bf16.gmra.mrb[8].mxu0 %vm409_vm1, %v1990_v39 }
 0x427   : > { %2867 = vmatprep.mubr.msk.bf16.mxu0 %vm4154_vm6, %v3081_v47 }
 0x42e   : > { %2868 = vmatmul.mubr.msk.bf16.vlgmr.msra.gmra.mrb[4].mxu0 %vm4155_vm7, %v3082_v5 }
 0x42f   : > { %2871 = vmatprep.mubr.msk.bf16.mxu0 %vm4156_vm8, %v3083_v19 }
 0x436   : > { %2872 = vmatmul.mubr.msk.bf16.gmra.mrb[8].mxu0 %vm4157_vm9, %v3084_v38 }
 0x4e2   : > { %v2777_v44 = vpop.f32.mrb[8].mxu1 }
 0x4e3   : > { %v1412_v52 = vpop.f32.mrb[9].mxu1  ;;  %v2911_v34 = vadd.f32 %v2777_v44, %v2514_v27 }
 0x4e4   : > { %v2778_v37 = vpop.f32.mrb[10].mxu1  ;;  %v2914_v48 = vadd.f32 %v2514_v27, %v1412_v52 }
 0x4e5   : > { %v1415_v46 = vpop.f32.mrb[11].mxu1  ;;  %v2917_v29 = vadd.f32 %v2778_v37, %v2514_v27 }
 0x4e6   : > { %v2920_v32 = vadd.f32 %v2514_v27, %v1415_v46 }
 0x4e7   : > { %v2918_v57 = vadd.f32 %v2917_v29, %v2515_v9 }
 0x4e8   : > { %v2921_v7 = vadd.f32 %v2920_v32, %v2515_v9 }
 0x4ea   : > { %v2781_v6 = vpop.f32.mrb[12].mxu1 }
 0x4eb   : > { %v1428_v11 = vpop.f32.mrb[13].mxu1  ;;  %v2923_v8 = vadd.f32 %v2781_v6, %v2514_v27 }
 0x4ec   : > { %v2782_v23 = vpop.f32.mrb[14].mxu1  ;;  %v2926_v22 = vadd.f32 %v2514_v27, %v1428_v11 }
 0x4ed   : > { %v1431_v26 = vpop.f32.mrb[15].mxu1  ;;  %v2929_v49 = vadd.f32 %v2782_v23, %v2514_v27  ;;  %v2924_v0 = vadd.f32 %v2923_v8, %v2515_v9 }
 0x4ee   : > { %v2932_v63 = vadd.f32 %v2514_v27, %v1431_v26  ;;  %v2927_v31 = vadd.f32 %v2926_v22, %v2515_v9 }
 0x4ef   : > { %v2930_v59 = vadd.f32 %v2929_v49, %v2515_v9 }
 0x4f0   : > { %v2933_v16 = vadd.f32 %v2932_v63, %v2515_v9 }
 0x501   : > { %v2869_v54 = vpop.f32.mrb[4].mxu0 }
 0x502   : > { %v2912_v55 = vadd.f32 %v2911_v34, %v2869_v54  ;;  %v2221_v41 = vpop.f32.mrb[5].mxu0 }
 0x503   : > { %v2915_v60 = vadd.f32 %v2914_v48, %v2221_v41  ;;  %v2870_v3 = vpop.f32.mrb[6].mxu0 }
 0x504   : > { %v2913_v42 = vadd.f32 %v2912_v55, %v2515_v9  ;;  %v2919_v56 = vadd.f32 %v2918_v57, %v2870_v3  ;;  %v2224_v17 = vpop.f32.mrb[7].mxu0 }
 0x505   : > { %v2916_v20 = vadd.f32 %v2915_v60, %v2515_v9  ;;  %v2922_v10 = vadd.f32 %v2921_v7, %v2224_v17 }
 0x506   : > { %2262 = vst.msk [vmem:[%s367_s30 + $0x10] sm:$0xff] %vm409_vm1, %v2913_v42  ;;  %2263 = vst.msk [vmem:[%s367_s30 + $0x18] sm:$0xff] %vm409_vm1, %v2919_v56 }
 0x507   : > { %2260 = vst.msk [vmem:[%s367_s30] sm:$0xff] %vm409_vm1, %v2916_v20  ;;  %2261 = vst.msk [vmem:[%s367_s30 + $0x8] sm:$0xff] %vm409_vm1, %v2922_v10 }
 0x509   : > { %v2873_v25 = vpop.f32.mrb[8].mxu0 }
 0x50a   : > { %v2925_v58 = vadd.f32 %v2924_v0, %v2873_v25  ;;  %v2237_v40 = vpop.f32.mrb[9].mxu0 }
 0x50b   : > { %v2928_v1 = vadd.f32 %v2927_v31, %v2237_v40  ;;  %v2874_v2 = vpop.f32.mrb[10].mxu0 }
 0x50c   : > { %2266 = vst.msk [vmem:[%s367_s30 + $0x30] sm:$0xff] %vm409_vm1, %v2925_v58  ;;  %v2931_v61 = vadd.f32 %v2930_v59, %v2874_v2  ;;  %v2240_v21 = vpop.f32.mrb[11].mxu0 }
 0x50d   : > { %2264 = vst.msk [vmem:[%s367_s30 + $0x20] sm:$0xff] %vm409_vm1, %v2928_v1  ;;  %v2934_v12 = vadd.f32 %v2933_v16, %v2240_v21 }
 0x50e   : > { %2267 = vst.msk [vmem:[%s367_s30 + $0x38] sm:$0xff] %vm409_vm1, %v2931_v61 }
 0x50f   : > { %2265 = vst.msk [vmem:[%s367_s30 + $0x28] sm:$0xff] %vm409_vm1, %v2934_v12 }
 0x510   : > { %3132 = shalt.err (!%p3129_p3)
}
 0x511   : > { %s3133_s26 = scalar_lea.hbm %s4046_s28, 1024  ;;  %s3137_s18 = scalar_lea.hbm %s4106_s10, 2048 }
 0x512   : > { %p3134_p4 = scmp.ne.s32.totalorder %s4046_s28, %s3133_s26  ;;  %p3138_p9 = scmp.lt.u32.totalorder %s4046_s28, %s4106_s10 }
 0x513   : > { %p3139_p10 = scmp.lt.u32.totalorder %s3137_s18, %s3133_s26  ;;  %p3141_p12 = scmp.lt.u32.totalorder %s3133_s26, %s4046_s28 }
 0x514   : > { %p3135_p7 = pnand %p3134_p4, %p3282_p5 }
 0x515   : > { %p3140_p11 = por %p3139_p10, %p3138_p9 }
 0x516   : > { %p3136_p8 = pneg %p3135_p7 }
 0x517   : > { %p3142_p13 = por %p3141_p12, %p3140_p11 }
 0x519   : > { %p3143_p0 = pnand %p3142_p13, %p3136_p8 }
 0x51b   : > { %3146 = shalt.err (!%p3143_p0)
}
 0x51c   : > { %s3187_s25 = smov 128   ;;  %s3188_s21 = smov 8  }
 0x51d   : > { %2999 = dma.vmem_to_hbm [thread:$0]  (%p3282_p5), %s4048_s12, 1024, %s4046_s28, %s4055_s17, %s3187_s25, %s3187_s25, %s3188_s21  }
 0x51e PF: > { %p3005_p1 = scmp.ge.s32.totalorder %s3181_s16, 2  ;;  %s2297_s29 = sand.u32 1, %s3169_s13  }
 0x51f   : > { %s2298_s26 = scalar_lea.sflag [#allocation3], %s2297_s29 }
 0x520   : > { %p3002_p2 = pnand %p3005_p1, %p3286_p6 }
 0x522   : > { %3164 = dma.done.wait (!%p3002_p2), %s2298_s26, 1024  }
 0x523   : > { %3166 = vsyncadd (!%p3002_p2), %s2298_s26, 4294966272  ;;  %p20_p3 = scmp.ge.s32.totalorder %s3269_s19, 4   ;;  %s4158_s13 = smov %s3173_s14 }
 0x524   : > { %s4159_s14 = smov %s3177_s15  ;;  %s4160_s15 = smov %s3280_s22 }
 0x525   : > { %s4161_s16 = smov %s3269_s19  ;;  %22 = sbr.rel (!%p20_p3) target bundleno = 3 (0x3), region = 106 }
 0x52c   :  { %2303 = vsyncpa [#allocation3], 1 }
 0x52d   :  { %2305 = vsyncpa [#allocation3 + $0x1], 1 }

</bundles_post_ra>
